<compile_context>
chip_gen: v6e
topology: v6e:2x2x1
jax: 0.10.0
libtpu: 0.0.40
codegen_flags: <defaults>
</compile_context>

<pallas_src>
import functools

import jax
import jax.numpy as jnp
from jax.experimental import pallas as pl
from jax.experimental.pallas import tpu as pltpu


# ------------------------------ Pallas kernel ------------------------------ #

def _hippocampus_kernel(key_ref, xm_ref, w1_ref, b1_ref, w2_ref, b2_ref,
                        neg_temp_ref, out_ref, *, num_groups, block_rows):
    i = pl.program_id(0)

    key = key_ref[...]             # (B, U)  precomputed key = MLP(x), resident
    xm = xm_ref[...]               # (TB, U) masked rows of this block (query)
    neg_temp = neg_temp_ref[...]   # (1, U)  pre-negated temperature

    B, U = key.shape
    TB = block_rows

    # Query-side MLP for this block only (MXU): Linear -> LeakyReLU -> Linear.
    h = jnp.dot(xm, w1_ref[...], preferred_element_type=jnp.float32) + b1_ref[...]
    h = jnp.where(h > 0, h, 0.01 * h)                       # LeakyReLU(0.01)
    query = jnp.dot(h, w2_ref[...], preferred_element_type=jnp.float32) + b2_ref[...]

    # Additive eye-mask bias on the *global* diagonal: 0 off-diag, -inf on-diag.
    row = jax.lax.broadcasted_iota(jnp.int32, (TB, B), 0) + i * TB
    col = jax.lax.broadcasted_iota(jnp.int32, (TB, B), 1)
    bias = jnp.where(row == col, -jnp.inf, 0.0)             # (TB, B) f32

    # w[r, j, u] = -|key[j,u] - query[r,u]| * temp[u]   (+ -inf on the diagonal)
    w = (jnp.abs(key[None, :, :] - query[:, None, :]) * neg_temp[None, :, :]
         + bias[:, :, None])

    # Grouped softmax over axis 1 of (TB, B//G, G, U); the final /8 is folded
    # into the reciprocal so there is no extra full-tensor pass.
    G = num_groups
    w4 = w.reshape(TB, B // G, G, U)
    m = jnp.max(w4, axis=1, keepdims=True)
    e = jnp.exp(w4 - m)
    s = jnp.sum(e, axis=1, keepdims=True)                   # (TB, 1, G, U)
    inv = pl.reciprocal(s, approx=False) * 0.125
    out_ref[...] = (e * inv).reshape(TB, B, U).astype(out_ref.dtype)


# --------------------------------- wrapper ---------------------------------- #

def _mlp(v, w1, b1, w2, b2):
    h = v @ w1 + b1
    h = jnp.where(h > 0, h, 0.01 * h)
    return h @ w2 + b2


def _pick_block_rows(B, requested):
    if requested is not None:
        assert B % requested == 0, "block_rows must divide batch"
        assert requested % 8 == 0 or requested == B, \
            "block_rows must be a multiple of 8 (or equal the batch)"
        return requested
    if B % 8 != 0:
        return B                      # single block == whole (small) batch
    # Cap at 16 so double-buffered f32 out blocks + exp temporaries fit v7x's
    # 64 MiB VMEM at realistic B/U; sweep 32/64 on v5e/v6e via `block_rows=`.
    for cand in (16, 8):
        if B % cand == 0:
            return cand
    return B


def _vmem_limit_bytes(B, U, H, TB, out_itemsize):
    out_block = TB * B * U * out_itemsize            # one output block
    tmp = TB * B * U * 4                             # f32 pairwise/exp temporaries
    resident = (B * U + 2 * U * H + H + 2 * U) * 4   # key + weights + temps
    need = 2 * out_block + 3 * tmp + 2 * resident + 2 * (TB * U * 4) + (1 << 20)
    need = int(need * 1.25)
    try:                                             # clamp to physical VMEM
        cap = int(pltpu.get_tpu_info().vmem_capacity_bytes)
    except Exception:                                # pragma: no cover
        cap = 64 << 20                               # safe on v5e/v6e/v7x
    hi = int(0.85 * cap)
    lo = min(32 << 20, hi)
    return max(lo, min(need, hi))


def hippocampus_forward(x, mask, params, num_groups, *, block_rows=None,
                        out_dtype=jnp.float32):
    """Returns (weights, mask) matching Hippocampus.forward semantics."""
    B, U = x.shape
    w1, b1, w2, b2, temp = params
    H = w1.shape[1]

    assert B % num_groups == 0, "batch must be divisible by num_attention_groups"
    # Note: if B == num_groups the group-softmax axis has length 1 and the
    # masked diagonal makes the whole group -inf -> NaN (matches the torch ref).

    TB = _pick_block_rows(B, block_rows)
    steps = B // TB

    # Hoisted out of the per-step body: key MLP over the full batch runs once,
    # as plain XLA, and enters the kernel as a VMEM-resident input.
    key = _mlp(x, w1, b1, w2, b2)
    xm = x * mask                    # UnitMask application (module glue)
    neg_temp = -temp                 # negate once, not per grid step

    kernel = functools.partial(_hippocampus_kernel,
                               num_groups=num_groups, block_rows=TB)

    out_itemsize = jnp.dtype(out_dtype).itemsize
    mm_flops = 4 * B * U * H                         # per-block query MLP total
    ew_flops = 8 * B * B * U                         # pairwise + softmax VPU work
    cost = pl.CostEstimate(
        flops=mm_flops + ew_flops,
        transcendentals=B * B * U,                   # exp
        bytes_accessed=(B * B * U * out_itemsize
                        + 4 * (2 * B * U + 2 * U * H + H + 2 * U)),
    )

    resident = lambda i: (0, 0)      # pinned in VMEM across grid steps
    # TODO(synk): pipeline_mode=pl.Buffered(1) on the resident operands would
    # halve their double-buffered footprint; omitted for lowering portability.
    weights = pl.pallas_call(
        kernel,
        out_shape=jax.ShapeDtypeStruct((B, B, U), out_dtype),
        grid=(steps,),
        in_specs=[
            pl.BlockSpec((B, U), resident),                  # key (precomputed)
            pl.BlockSpec((TB, U), lambda i: (i, 0)),         # masked query rows
            pl.BlockSpec((U, H), resident),                  # W1
            pl.BlockSpec((1, H), resident),                  # b1
            pl.BlockSpec((H, U), resident),                  # W2
            pl.BlockSpec((1, U), resident),                  # b2
            pl.BlockSpec((1, U), resident),                  # -temperature
        ],
        out_specs=pl.BlockSpec((TB, B, U), lambda i: (i, 0, 0)),
        compiler_params=pltpu.CompilerParams(
            dimension_semantics=("parallel",),
            vmem_limit_bytes=_vmem_limit_bytes(B, U, H, TB, out_itemsize)),
        cost_estimate=cost,
    )(key, xm, w1, b1, w2, b2, neg_temp)
    return weights, mask


# ------------------------ init + pure-JAX reference ------------------------- #

def init_params(key, num_units, dim_hidden):
    """Mirrors the module: xavier_normal_ weights, zero bias, temperature=ones.
    Weights stored pre-transposed as (in, out)."""
    k1, k2 = jax.random.split(key)
    std1 = (2.0 / (num_units + dim_hidden)) ** 0.5
    std2 = (2.0 / (dim_hidden + num_units)) ** 0.5
    w1 = jax.random.normal(k1, (num_units, dim_hidden), jnp.float32) * std1
    b1 = jnp.zeros((1, dim_hidden), jnp.float32)
    w2 = jax.random.normal(k2, (dim_hidden, num_units), jnp.float32) * std2
    b2 = jnp.zeros((1, num_units), jnp.float32)
    temp = jnp.ones((1, num_units), jnp.float32)
    return w1, b1, w2, b2, temp


def ref_forward(x, mask, params, num_groups):
    """Pure-JAX reference (torch-faithful) for the correctness check."""
    w1, b1, w2, b2, temp = params
    key = _mlp(x, w1, b1, w2, b2)
    query = _mlp(x * mask, w1, b1, w2, b2)
    B, U = x.shape
    w = -jnp.abs(key[None, :, :] - query[:, None, :]) * temp[None, :, :]
    eye = jnp.eye(B, dtype=bool)
    w = jnp.where(eye[:, :, None], -jnp.inf, w)
    G = num_groups
    w = jax.nn.softmax(w.reshape(B, B // G, G, U), axis=1).reshape(B, B, U) / 8.0
    return w


if __name__ == "__main__":
    # Small shapes consistent with the module; U and H are multiples of 128 for
    # MXU / lane density (review item), batch divisible by num_groups=8.
    B, U, H, G = 32, 128, 128, 8
    mask_p = 0.2

    root = jax.random.PRNGKey(0)
    kx, kp, km = jax.random.split(root, 3)

    x = jax.random.normal(kx, (B, U), jnp.float32)
    params = init_params(kp, U, H)

    # TODO(synk): UnitMask is not defined in the provided source; approximated
    # as a deterministic Bernoulli keep-mask over units (keep prob 1 - mask_p).
    mask = (jax.random.uniform(km, (B, U)) >= mask_p).astype(jnp.float32)

    ref = ref_forward(x, mask, params, G)

    # float32 output: exact module semantics.
    weights, mask_out = hippocampus_forward(x, mask, params, G)
    weights = jax.block_until_ready(weights)
    assert weights.shape == (B, B, U) and mask_out.shape == (B, U)
    assert bool(jnp.all(jnp.isfinite(weights)))
    assert bool(jnp.allclose(weights, ref, atol=2e-5, rtol=1e-4))

    # bf16 output path (halves the dominant B^2*U HBM writeback); looser check.
    weights_bf16, _ = hippocampus_forward(x, mask, params, G,
                                          out_dtype=jnp.bfloat16)
    weights_bf16 = jax.block_until_ready(weights_bf16)
    assert bool(jnp.allclose(weights_bf16.astype(jnp.float32), ref,
                             atol=4e-3, rtol=4e-2))

    print("KERNEL_OK")
</pallas_src>

<mosaic_0001>
module attributes {stable_mosaic.version = 11 : i64} {
  func.func @_hippocampus_kernel(%arg0: i32, %arg1: memref<32x128xf32, #tpu.memory_space<vmem>>, %arg2: memref<16x128xf32, #tpu.memory_space<vmem>>, %arg3: memref<128x128xf32, #tpu.memory_space<vmem>>, %arg4: memref<1x128xf32, #tpu.memory_space<vmem>>, %arg5: memref<128x128xf32, #tpu.memory_space<vmem>>, %arg6: memref<1x128xf32, #tpu.memory_space<vmem>>, %arg7: memref<1x128xf32, #tpu.memory_space<vmem>>, %arg8: memref<16x32x128xf32, #tpu.memory_space<vmem>>) attributes {dimension_semantics = [#tpu.dimension_semantics<parallel>], iteration_bounds = array<i64: 2>, scalar_prefetch = 0 : i64, scratch_operands = 0 : i64, tpu.core_type = #tpu.core_type<tc>, window_params = [{pipeline_mode = #tpu.pipeline_mode<synchronous>, transform_indices = @transform_0, window_bounds = array<i64: 32, 128>}, {transform_indices = @transform_1, window_bounds = array<i64: 16, 128>}, {pipeline_mode = #tpu.pipeline_mode<synchronous>, transform_indices = @transform_2, window_bounds = array<i64: 128, 128>}, {pipeline_mode = #tpu.pipeline_mode<synchronous>, transform_indices = @transform_3, window_bounds = array<i64: 1, 128>}, {pipeline_mode = #tpu.pipeline_mode<synchronous>, transform_indices = @transform_4, window_bounds = array<i64: 128, 128>}, {pipeline_mode = #tpu.pipeline_mode<synchronous>, transform_indices = @transform_5, window_bounds = array<i64: 1, 128>}, {pipeline_mode = #tpu.pipeline_mode<synchronous>, transform_indices = @transform_6, window_bounds = array<i64: 1, 128>}, {transform_indices = @transform_7, window_bounds = array<i64: 16, 32, 128>}]} {
    %c0 = arith.constant 0 : index
    %c0_0 = arith.constant 0 : index
    %0 = vector.load %arg1[%c0, %c0_0] : memref<32x128xf32, #tpu.memory_space<vmem>>, vector<32x128xf32>
    %c0_1 = arith.constant 0 : index
    %c0_2 = arith.constant 0 : index
    %1 = vector.load %arg2[%c0_1, %c0_2] : memref<16x128xf32, #tpu.memory_space<vmem>>, vector<16x128xf32>
    %c0_3 = arith.constant 0 : index
    %c0_4 = arith.constant 0 : index
    %2 = vector.load %arg7[%c0_3, %c0_4] : memref<1x128xf32, #tpu.memory_space<vmem>>, vector<1x128xf32>
    %c0_5 = arith.constant 0 : index
    %c0_6 = arith.constant 0 : index
    %3 = vector.load %arg3[%c0_5, %c0_6] : memref<128x128xf32, #tpu.memory_space<vmem>>, vector<128x128xf32>
    %cst = arith.constant dense<0.000000e+00> : vector<16x128xf32>
    %4 = tpu.matmul %1, %3, %cst {dimension_numbers = #tpu.dot_dimension_numbers<[1], [0], [0], [1], [0, 0, 1, 1], [], []>} : vector<16x128xf32>, vector<128x128xf32>, vector<16x128xf32> -> vector<16x128xf32>
    %c0_7 = arith.constant 0 : index
    %c0_8 = arith.constant 0 : index
    %5 = vector.load %arg4[%c0_7, %c0_8] : memref<1x128xf32, #tpu.memory_space<vmem>>, vector<1x128xf32>
    %6 = vector.broadcast %5 : vector<1x128xf32> to vector<16x128xf32>
    %7 = arith.addf %4, %6 : vector<16x128xf32>
    %cst_9 = arith.constant 0.000000e+00 : f32
    %8 = vector.broadcast %cst_9 : f32 to vector<16x128xf32>
    %9 = arith.cmpf ogt, %7, %8 : vector<16x128xf32>
    %cst_10 = arith.constant 0.00999999977 : f32
    %10 = vector.broadcast %cst_10 : f32 to vector<16x128xf32>
    %11 = arith.mulf %10, %7 : vector<16x128xf32>
    %12 = arith.select %9, %7, %11 : vector<16x128xi1>, vector<16x128xf32>
    %c0_11 = arith.constant 0 : index
    %c0_12 = arith.constant 0 : index
    %13 = vector.load %arg5[%c0_11, %c0_12] : memref<128x128xf32, #tpu.memory_space<vmem>>, vector<128x128xf32>
    %cst_13 = arith.constant dense<0.000000e+00> : vector<16x128xf32>
    %14 = tpu.matmul %12, %13, %cst_13 {dimension_numbers = #tpu.dot_dimension_numbers<[1], [0], [0], [1], [0, 0, 1, 1], [], []>} : vector<16x128xf32>, vector<128x128xf32>, vector<16x128xf32> -> vector<16x128xf32>
    %c0_14 = arith.constant 0 : index
    %c0_15 = arith.constant 0 : index
    %15 = vector.load %arg6[%c0_14, %c0_15] : memref<1x128xf32, #tpu.memory_space<vmem>>, vector<1x128xf32>
    %16 = vector.broadcast %15 : vector<1x128xf32> to vector<16x128xf32>
    %17 = arith.addf %14, %16 : vector<16x128xf32>
    %18 = tpu.iota {dimensions = array<i32: 0>} : vector<16x32xi32>
    %c16_i32 = arith.constant 16 : i32
    %19 = arith.muli %arg0, %c16_i32 : i32
    %20 = vector.broadcast %19 : i32 to vector<16x32xi32>
    %21 = arith.addi %18, %20 : vector<16x32xi32>
    %22 = tpu.iota {dimensions = array<i32: 1>} : vector<16x32xi32>
    %23 = arith.cmpi eq, %21, %22 : vector<16x32xi32>
    %cst_16 = arith.constant 0xFF800000 : f32
    %cst_17 = arith.constant 0.000000e+00 : f32
    %24 = vector.broadcast %cst_16 : f32 to vector<16x32xf32>
    %25 = vector.broadcast %cst_17 : f32 to vector<16x32xf32>
    %26 = arith.select %23, %24, %25 : vector<16x32xi1>, vector<16x32xf32>
    %27 = vector.shape_cast %0 : vector<32x128xf32> to vector<1x32x128xf32>
    %28 = vector.shape_cast %17 : vector<16x128xf32> to vector<16x1x128xf32>
    %29 = vector.broadcast %27 : vector<1x32x128xf32> to vector<16x32x128xf32>
    %30 = vector.broadcast %28 : vector<16x1x128xf32> to vector<16x32x128xf32>
    %31 = arith.subf %29, %30 : vector<16x32x128xf32>
    %32 = math.absf %31 : vector<16x32x128xf32>
    %33 = vector.shape_cast %2 : vector<1x128xf32> to vector<1x1x128xf32>
    %34 = vector.broadcast %33 : vector<1x1x128xf32> to vector<16x32x128xf32>
    %35 = arith.mulf %32, %34 : vector<16x32x128xf32>
    %36 = vector.shape_cast %26 : vector<16x32xf32> to vector<16x32x1xf32>
    %37 = vector.broadcast %36 : vector<16x32x1xf32> to vector<16x32x128xf32>
    %38 = arith.addf %35, %37 : vector<16x32x128xf32>
    %39 = vector.shape_cast %38 : vector<16x32x128xf32> to vector<16x4x8x128xf32>
    %cst_18 = arith.constant dense<0xFF800000> : vector<16x8x128xf32>
    %40 = vector.multi_reduction <maximumf>, %39, %cst_18 [1] : vector<16x4x8x128xf32> to vector<16x8x128xf32>
    %41 = vector.shape_cast %40 : vector<16x8x128xf32> to vector<16x1x8x128xf32>
    %42 = vector.broadcast %41 : vector<16x1x8x128xf32> to vector<16x4x8x128xf32>
    %43 = arith.subf %39, %42 : vector<16x4x8x128xf32>
    %44 = math.exp %43 : vector<16x4x8x128xf32>
    %cst_19 = arith.constant dense<0.000000e+00> : vector<16x8x128xf32>
    %45 = vector.multi_reduction <add>, %44, %cst_19 [1] : vector<16x4x8x128xf32> to vector<16x8x128xf32>
    %46 = vector.shape_cast %45 : vector<16x8x128xf32> to vector<16x1x8x128xf32>
    %47 = tpu.reciprocal %46 : vector<16x1x8x128xf32> -> vector<16x1x8x128xf32>
    %cst_20 = arith.constant 1.250000e-01 : f32
    %48 = vector.broadcast %cst_20 : f32 to vector<16x1x8x128xf32>
    %49 = arith.mulf %47, %48 : vector<16x1x8x128xf32>
    %50 = vector.broadcast %49 : vector<16x1x8x128xf32> to vector<16x4x8x128xf32>
    %51 = arith.mulf %44, %50 : vector<16x4x8x128xf32>
    %52 = vector.shape_cast %51 : vector<16x4x8x128xf32> to vector<16x32x128xf32>
    %c0_21 = arith.constant 0 : index
    %c0_22 = arith.constant 0 : index
    %c0_23 = arith.constant 0 : index
    %53 = vector.load %arg8[%c0_21, %c0_22, %c0_23] : memref<16x32x128xf32, #tpu.memory_space<vmem>>, vector<16x32x128xf32>
    tpu.vector_store %arg8[%c0_21, %c0_22, %c0_23], %52 {strides = array<i32>} : memref<16x32x128xf32, #tpu.memory_space<vmem>>, vector<16x32x128xf32>,
    return
  }
  func.func @transform_0(%arg0: i32) -> (i32, i32) {
    %c0_i32 = arith.constant 0 : i32
    %c0_i32_0 = arith.constant 0 : i32
    %c0_i32_1 = arith.constant 0 : i32
    return %c0_i32, %c0_i32_0 : i32, i32
  }
  func.func @transform_1(%arg0: i32) -> (i32, i32) {
    %c0_i32 = arith.constant 0 : i32
    %c0_i32_0 = arith.constant 0 : i32
    return %arg0, %c0_i32 : i32, i32
  }
  func.func @transform_2(%arg0: i32) -> (i32, i32) {
    %c0_i32 = arith.constant 0 : i32
    %c0_i32_0 = arith.constant 0 : i32
    %c0_i32_1 = arith.constant 0 : i32
    return %c0_i32, %c0_i32_0 : i32, i32
  }
  func.func @transform_3(%arg0: i32) -> (i32, i32) {
    %c0_i32 = arith.constant 0 : i32
    %c0_i32_0 = arith.constant 0 : i32
    %c0_i32_1 = arith.constant 0 : i32
    return %c0_i32, %c0_i32_0 : i32, i32
  }
  func.func @transform_4(%arg0: i32) -> (i32, i32) {
    %c0_i32 = arith.constant 0 : i32
    %c0_i32_0 = arith.constant 0 : i32
    %c0_i32_1 = arith.constant 0 : i32
    return %c0_i32, %c0_i32_0 : i32, i32
  }
  func.func @transform_5(%arg0: i32) -> (i32, i32) {
    %c0_i32 = arith.constant 0 : i32
    %c0_i32_0 = arith.constant 0 : i32
    %c0_i32_1 = arith.constant 0 : i32
    return %c0_i32, %c0_i32_0 : i32, i32
  }
  func.func @transform_6(%arg0: i32) -> (i32, i32) {
    %c0_i32 = arith.constant 0 : i32
    %c0_i32_0 = arith.constant 0 : i32
    %c0_i32_1 = arith.constant 0 : i32
    return %c0_i32, %c0_i32_0 : i32, i32
  }
  func.func @transform_7(%arg0: i32) -> (i32, i32, i32) {
    %c0_i32 = arith.constant 0 : i32
    %c0_i32_0 = arith.constant 0 : i32
    %c0_i32_1 = arith.constant 0 : i32
    return %arg0, %c0_i32, %c0_i32_0 : i32, i32, i32
  }
}

</mosaic_0001>

<bundles_post_ra>
// kernel: tpu_custom_call.1
= control target key start
LH: loop header
LB: loop body
LE: loop exit
PB: predicated region body
PF: predicated region fallthrough
CT: control target
= control target key end

     0   :  { %s3631_s0 = inlined_call_operand.hbm [shape: f32[32,128], index: 0, kind: input, shape index: {}]   ;;  %s3632_s1 = inlined_call_operand.hbm [shape: f32[32,128], index: 1, kind: input, shape index: {}]   ;;  %s3633_s2 = inlined_call_operand.hbm [shape: f32[128,128], index: 2, kind: input, shape index: {}]   ;;  %s3634_s3 = inlined_call_operand.vmem [shape: f32[1,128], index: 3, kind: input, shape index: {}]   ;;  %s3635_s4 = inlined_call_operand.hbm [shape: f32[128,128], index: 4, kind: input, shape index: {}]   ;;  %s3636_s5 = inlined_call_operand.vmem [shape: f32[1,128], index: 5, kind: input, shape index: {}]   ;;  %s3637_s6 = inlined_call_operand.vmem [shape: f32[1,128], index: 6, kind: input, shape index: {}]   ;;  %s3638_s7 = inlined_call_operand.hbm [shape: f32[32,32,128], index: 7, kind: output, shape index: {}]  }
   0x1   :  { %3658 = sst [smem:[#allocation60_spill]] %s3631_s0 }
   0x2   :  { %3659 = sst [smem:[#allocation61_spill]] %s3633_s2 }
   0x3   :  { %12 = vsyncpa [#allocation3], 0 }
   0x4   :  { %13 = vsyncpa [#allocation6], 0 }
   0x5   :  { %15 = vsyncpa [#allocation6 + $0x1], 0 }
   0x6   :  { %16 = vsyncpa [#allocation9], 0 }
   0x7   :  { %17 = vsyncpa [#allocation4], 0 }
   0x8   :  { %19 = vsyncpa [#allocation4 + $0x1], 0  ;;  %s2495_s24 = smov 0   ;;  %s2497_s25 = smov 0  }
   0x9   :  { %s2499_s26 = smov 0   ;;  %s2501_s27 = smov 0  }
   0xa LB: > { %s2516_s28 = sadd.s32 4294967295, %s2442_s27   ;;  %s1878_s29 = sadd.s32 4294967294, %s2442_s27   ;;  %s2442_s27 = sphi %s2501_s27, %s3774_s27   ;;  %s2438_s26 = sphi %s2499_s26, %s3773_s26   ;;  %s2434_s25 = sphi %s2497_s25, %s3772_s25   ;;  %s2430_s24 = sphi %s2495_s24, %s3771_s24  }
   0xb   : > { %s2520_s30 = sadd.s32 1, %s2442_s27   ;;  %s53_s8 = sadd.s32 1, %s2438_s26 }
   0xc   : > { %s50_s9 = ssub.s32 %s2442_s27, %s2520_s30  ;;  %p60_p0 = scmp.ne.s32.totalorder %s2438_s26, %s2434_s25 }
   0xd   : > { %p51_p1 = scmp.eq.s32.totalorder %s50_s9, 0  ;;  %p61_p2 = scmp.eq.s32.totalorder %s2442_s27, 0 }
   0xe   : > { %p66_p3 = scmp.ne.s32.totalorder %s2434_s25, %s2430_s24  ;;  %p3640_p4 = scmp.eq.s32.totalorder %s2516_s28, 0 }
   0xf   : > { %s2532_s10 = scalar_select %p51_p1, %s2438_s26, %s53_s8  }
  0x10   : > { %p2534_p5 = por %p61_p2, %p60_p0  ;;  %p2540_p6 = por %p3640_p4, %p66_p3 }
  0x11   : > { %3660 = sst [smem:[#allocation16_spill]] %s2532_s10  ;;  %p195_p7 = scmp.eq.s32.totalorder %s2516_s28, 1 }
  0x12   : > { %s3662_s12 = scalar_select %p2540_p6, 1, 0 }
  0x13   : > { %p201_p8 = scmp.eq.s32.totalorder %s1878_s29, 1  ;;  %p1879_p9 = scmp.ge.s32.totalorder %s2442_s27, 1 }
  0x14   : > { %p208_p10 = scmp.lt.s32.totalorder %s2442_s27, 3  ;;  %p2547_p11 = por %p195_p7, %p60_p0 }
  0x15   : > { %p2551_p12 = por %p201_p8, %p66_p3  ;;  %s2444_s16 = smov [#allocation7]  }
  0x16   : > { %s3663_s13 = scalar_select %p2547_p11, 1, 0 }
  0x17   : > { %s3664_s14 = scalar_select %p2551_p12, 1, 0 }
  0x18   : > { %p2555_p13 = pnand %p1879_p9, %p208_p10  ;;  %s233_s17 = sshll.u32 %s2444_s16, 4  ;;  %s234_s17 = int_to_ptr.vmem [resolvable:$true] %s233_s17 }
  0x19   : > { %p2049_p0 = scmp.lt.s32.totalorder %s2442_s27, 2  ;;  %s2445_s19 = smov [#allocation2]  }
  0x1a   : > { %s3665_s15 = scalar_select %p2555_p13, 1, 0 }
  0x1b   : > { %p2028_p1 = pneg %p2555_p13  ;;  %s220_s20 = sshll.u32 %s2445_s19, 4  ;;  %s221_s20 = int_to_ptr.vmem [resolvable:$true] %s220_s20 }
  0x1c   : > { %s2271_s21 = scalar_lea.vmem %s234_s17, 2048  ;;  %p2279_p10 = scmp.lt.s32.totalorder %s234_s17, %s234_s17 }
  0x1d   : > { %p2564_p6 = pnand %p2028_p1, %p3640_p4  ;;  %p2272_p7 = scmp.ne.s32.totalorder %s234_s17, %s2271_s21 }
  0x1e   : > { %p2280_p2 = scmp.lt.s32.totalorder %s2271_s21, %s2271_s21 }
  0x1f   : > { %p2262_p3 = pneg %p2564_p6 }
  0x20   : > { %p2281_p1 = por %p2280_p2, %p2279_p10 }
  0x21   : > { %p2274_p8 = pnand %p2272_p7, %p2262_p3 }
  0x23   : > { %p2275_p9 = pneg %p2274_p8 }
  0x25   : > { %p2282_p4 = pnand %p2281_p1, %p2275_p9 }
  0x27   : > { %2285 = shalt.err (!%p2282_p4)
}
  0x28   : > { %s2446_s22 = smov 128   ;;  %s2447_s23 = smov 8  }
  0x29   : > { %s3667_s2 = sld [smem:[#allocation61_spill]]  ;;  %p2586_p7 = pnand %p2049_p0, %p2534_p5 }
  0x2a   : > { %s2297_s16 = scalar_lea.vmem %s221_s20, 512  ;;  %p2305_p9 = scmp.lt.s32.totalorder %s221_s20, %s221_s20 }
  0x2b   : > { %p2298_p4 = scmp.ne.s32.totalorder %s221_s20, %s2297_s16  ;;  %p2306_p10 = scmp.lt.s32.totalorder %s2297_s16, %s2297_s16 }
  0x2d   : > { %p2300_p2 = pnand %p2298_p4, %p2262_p3  ;;  %p2307_p1 = por %p2306_p10, %p2305_p9 }
  0x2f   : > { %2034 = dma.hbm_to_vmem [thread:$0]  (!%p2564_p6), %s3667_s2, 2048, %s234_s17, [#allocation6], %s2446_s22, %s2446_s22, %s2447_s23  }
  0x30   : > { %p2301_p8 = pneg %p2300_p2 }
  0x32   : > { %p2308_p12 = pnand %p2307_p1, %p2301_p8 }
  0x34   : > { %2311 = shalt.err (!%p2308_p12)
}
  0x35   : > { %s3669_s0 = sld [smem:[#allocation60_spill]]  ;;  %s2448_s19 = smov [#allocation8]  }
  0x36   : > { %s249_s21 = sshll.u32 %s2448_s19, 4  ;;  %s269_s29 = sand.u32 1, %s2442_s27   ;;  %s250_s21 = int_to_ptr.vmem [resolvable:$true] %s249_s21 }
  0x37   : > { %s2323_s8 = scalar_lea.vmem %s250_s21, 2048  ;;  %p2331_p4 = scmp.lt.s32.totalorder %s250_s21, %s250_s21 }
  0x38   : > { %p2324_p5 = scmp.ne.s32.totalorder %s250_s21, %s2323_s8  ;;  %p2332_p2 = scmp.lt.s32.totalorder %s2323_s8, %s2323_s8 }
  0x3a   : > { %p2326_p12 = pnand %p2324_p5, %p2262_p3  ;;  %p2333_p8 = por %p2332_p2, %p2331_p4 }
  0x3b   : > { %2031 = dma.hbm_to_vmem [thread:$0]  (!%p2564_p6), %s3669_s0, 512, %s221_s20, [#allocation3], %s2446_s22, %s2446_s22, %s2447_s23  }
  0x3c   : > { %p2327_p0 = pneg %p2326_p12 }
  0x3e   : > { %p2334_p9 = pnand %p2333_p8, %p2327_p0 }
  0x40   : > { %2337 = shalt.err (!%p2334_p9)
}
  0x41   : > { %2037 = dma.hbm_to_vmem [thread:$0]  (!%p2564_p6), %s3635_s4, 2048, %s250_s21, [#allocation9], %s2446_s22, %s2446_s22, %s2447_s23  }
  0x42   : > { %s271_s11 = sand.u32 1, %s2438_s26   ;;  %s1903_s17 = sshll.u32 %s2442_s27, 8 }
  0x43   : > { %s1884_s19 = sshll.u32 %s271_s11, 4  ;;  %s2618_s2 = scalar_lea.hbm %s3632_s1, %s1903_s17 }
  0x44   : > { %s273_s18 = scalar_lea.vmem [#allocation5], %s1884_s19  ;;  %s2622_s20 = scalar_lea.sflag [#allocation6], %s269_s29 }
  0x45   : > { %s280_s10 = sshll.u32 %s273_s18, 4  ;;  %s2338_s16 = scalar_lea.hbm %s2618_s2, 256  ;;  %s2620_s10 = int_to_ptr.vmem [resolvable:$true] %s280_s10 }
  0x46   : > { %p2339_p3 = scmp.ne.s32.totalorder %s2618_s2, %s2338_s16  ;;  %p2340_p6 = pneg %p2586_p7 }
  0x47   : > { %s2343_s0 = scalar_lea.hbm %s3632_s1, 512  ;;  %p2344_p5 = scmp.lt.s32.totalorder %s2618_s2, %s3632_s1 }
  0x48   : > { %p2341_p10 = pnand %p2340_p6, %p2339_p3  ;;  %p2345_p12 = scmp.lt.s32.totalorder %s2343_s0, %s2338_s16 }
  0x4a   : > { %p2342_p1 = pneg %p2341_p10  ;;  %p2346_p0 = por %p2345_p12, %p2344_p5 }
  0x4c   : > { %p2347_p4 = pnand %p2346_p0, %p2342_p1 }
  0x4e   : > { %2350 = shalt.err (!%p2347_p4)
}
  0x4f   : > { %s2351_s29 = scalar_lea.vmem %s2620_s10, 256  ;;  %s2449_s19 = smov [#allocation5]  }
  0x50   : > { %p2352_p2 = scmp.ne.s32.totalorder %s2620_s10, %s2351_s29  ;;  %s2356_s18 = sshll.u32 %s2449_s19, 4  ;;  %s2357_s18 = int_to_ptr.vmem [resolvable:$false] %s2356_s18 }
  0x51   : > { %s2358_s21 = scalar_lea.vmem %s2357_s18, 512  ;;  %p2359_p3 = scmp.lt.s32.totalorder %s2620_s10, %s2357_s18 }
  0x52   : > { %p2354_p8 = pnand %p2352_p2, %p2340_p6  ;;  %p2360_p10 = scmp.lt.s32.totalorder %s2358_s21, %s2351_s29 }
  0x54   : > { %p2355_p9 = pneg %p2354_p8  ;;  %p2361_p11 = por %p2360_p10, %p2359_p3 }
  0x56   : > { %p2362_p13 = pnand %p2361_p11, %p2355_p9 }
  0x58   : > { %2365 = shalt.err (!%p2362_p13)
}
  0x59   : > { %2041 = dma.hbm_to_vmem [thread:$0]  (!%p2586_p7), %s2618_s2, 256, %s2620_s10, %s2622_s20, %s2446_s22, %s2446_s22, %s2447_s23  }
  0x5a   : > { %p3670_p6 = scmp.ne.s32.totalorder %s3665_s15, 0 }
  0x5c   : > { %292 = sbr.rel (%p3670_p6) target bundleno = 767 (0x2ff), region = 48 }
  0x61   : > { %p3671_p1 = scmp.eq.s32.totalorder %s2516_s28, 0 }
  0x63   : > { %2409 = dma.done.wait (%p3671_p1), [#allocation3], 512   ;;  %p3672_p5 = pmov %p3671_p1 }
  0x64   : > { %s298_s9 = sand.u32 1, %s2516_s28   ;;  %s2654_s16 = sand.u32 1, %s2434_s25  }
  0x65   : > { %2411 = vsyncadd (%p3672_p5), [#allocation3], 4294966784  ;;  %s1889_s11 = sshll.u32 %s2654_s16, 4  ;;  %s299_s0 = scalar_lea.sflag [#allocation6], %s298_s9 }
  0x66   : > { %s2657_s17 = scalar_lea.vmem [#allocation5], %s1889_s11  ;;  %p3673_p11 = scmp.ne.s32.totalorder %s3662_s12, 0 }
  0x68   : > { %2413 = dma.done.wait (%p3673_p11), %s299_s0, 256  }
  0x69   : > { %2415 = vsyncadd (%p3673_p11), %s299_s0, 4294967040  ;;  %p3674_p13 = pmov %p3671_p1 }
  0x6a   : > { %p3675_p7 = pmov %p3671_p1 }
  0x6b   : > { %2417 = dma.done.wait (%p3674_p13), [#allocation6], 2048  }
  0x6c   : > { %2419 = vsyncadd (%p3675_p7), [#allocation6], 4294965248  ;;  %p3676_p12 = pmov %p3671_p1 }
  0x6d   : > { %p3677_p0 = pmov %p3671_p1 }
  0x6e   : > { %2421 = dma.done.wait (%p3676_p12), [#allocation9], 2048  }
  0x6f   : > { %2423 = vsyncadd (%p3677_p0), [#allocation9], 4294965248  ;;  %v552_v0 = vlaneseq  ;;  %s1895_s2 = sshll.u32 %s2516_s28, 4  ;;  %v365_v6 = vld [vmem:[#allocation7 + $0x78] sm:$0xff]  ;;  %v364_v7 = vld [vmem:[#allocation7 + $0x70] sm:$0xff]  ;;  %v2450_v8 = vmov 0.0  }
  0x70   : > { %v2672_v1 = vstv %s1895_s2  ;;  %1942 = vmatprep.subr.mxu0 %v365_v6  ;;  %v363_v11 = vld [vmem:[#allocation7 + $0x68] sm:$0xff]  ;;  %v362_v12 = vld [vmem:[#allocation7 + $0x60] sm:$0xff]  ;;  %v361_v14 = vld [vmem:[#allocation7 + $0x58] sm:$0xff]  ;;  %s1892_s8 = sshll.u32 %s2654_s16, 9  ;;  %s1905_s21 = sshll.u32 %s2516_s28, 13 }
  0x71   : > { %v2674_v2 = vshrl.u32 %v552_v0, 7  ;;  %v2676_v3 = vand.u32 127, %v552_v0  ;;  %1943 = vmatpush3.msra.mxu0 %v365_v6  ;;  %v347_v13 = vld [vmem:[%s2657_s17] sm:$0xff]  ;;  %v469_v15 = vld [vmem:[#allocation8 + $0x78] sm:$0xff]  ;;  %v467_v18 = vld [vmem:[#allocation8 + $0x68] sm:$0xff]  ;;  %s3312_s29 = scalar_lea.vmem [#allocation10], %s1892_s8 }
  0x72   : > { %1944 = vmatprep.subr.mxu0 %v364_v7  ;;  %1974 = vmatprep.mubr.f32.mxu0 %v347_v13  ;;  %v468_v16 = vld [vmem:[#allocation8 + $0x70] sm:$0xff]  ;;  %v359_v19 = vld [vmem:[#allocation7 + $0x48] sm:$0xff]  ;;  %v466_v20 = vld [vmem:[#allocation8 + $0x60] sm:$0xff]  ;;  %s1774_s9 = sshll.u32 %s3312_s29, 4  ;;  %s1760_s28 = scalar_lea.sflag [#allocation4], %s2654_s16  ;;  %s3584_s9 = int_to_ptr.vmem [resolvable:$true] %s1774_s9 }
  0x73   : > { %v557_v4 = vadd.s32 %v2672_v1, %v2674_v2  ;;  %v2681_v5 = vsub.s32 0, %v2674_v2  ;;  %1945 = vmatpush3.msra.mxu0 %v364_v7  ;;  %1977 = vmatprep.subr.mxu1 %v469_v15  ;;  %v360_v17 = vld [vmem:[#allocation7 + $0x50] sm:$0xff]  ;;  %v358_v21 = vld [vmem:[#allocation7 + $0x40] sm:$0xff]  ;;  %v465_v22 = vld [vmem:[#allocation8 + $0x58] sm:$0xff]  ;;  %v964_v23 = vsub.s32 1, %v2674_v2  ;;  %v983_v35 = vsub.s32 2, %v2674_v2 }
  0x74   : > { %1946 = vmatprep.subr.mxu0 %v363_v11  ;;  %1978 = vmatpush3.msra.mxu1 %v469_v15  ;;  %v357_v24 = vld [vmem:[#allocation7 + $0x38] sm:$0xff]  ;;  %v356_v25 = vld [vmem:[#allocation7 + $0x30] sm:$0xff]  ;;  %v355_v28 = vld [vmem:[#allocation7 + $0x28] sm:$0xff]  ;;  %v1002_v43 = vsub.s32 3, %v2674_v2  ;;  %v1021_v46 = vsub.s32 4, %v2674_v2  ;;  %v1040_v51 = vsub.s32 5, %v2674_v2 }
  0x75   : > { %vm561_vm0 = vcmp.eq.s32.totalorder %v557_v4, %v2676_v3  ;;  %1947 = vmatpush3.msra.mxu0 %v363_v11  ;;  %1979 = vmatprep.subr.mxu1 %v468_v16  ;;  %v464_v26 = vld [vmem:[#allocation8 + $0x50] sm:$0xff]  ;;  %v463_v29 = vld [vmem:[#allocation8 + $0x48] sm:$0xff]  ;;  %v354_v30 = vld [vmem:[#allocation7 + $0x20] sm:$0xff]  ;;  %v1059_v53 = vsub.s32 6, %v2674_v2  ;;  %v1078_v54 = vsub.s32 7, %v2674_v2  ;;  %v554_v55 = vadd.s32 8, %v2674_v2 }
  0x76   : > { %v2685_v9 = vsel %vm561_vm0, -inf, %v2450_v8  ;;  %1948 = vmatprep.subr.mxu0 %v362_v12  ;;  %1980 = vmatpush3.msra.mxu1 %v468_v16  ;;  %v353_v31 = vld [vmem:[#allocation7 + $0x18] sm:$0xff]  ;;  %v462_v32 = vld [vmem:[#allocation8 + $0x40] sm:$0xff]  ;;  %v352_v33 = vld [vmem:[#allocation7 + $0x10] sm:$0xff]  ;;  %s2366_s2 = scalar_lea.vmem %s3584_s9, 8192  ;;  %p3767_p2 = scmp.ne.s32.totalorder %s3663_s13, 0 }
  0x77   : > { %v946_v10 = vrot.slane %v2685_v9, %v2681_v5  ;;  %1949 = vmatpush3.msra.mxu0 %v362_v12  ;;  %1981 = vmatprep.subr.mxu1 %v467_v18  ;;  %v965_v27 = vrot.slane %v2685_v9, %v964_v23  ;;  %v461_v34 = vld [vmem:[#allocation8 + $0x38] sm:$0xff]  ;;  %v351_v36 = vld [vmem:[#allocation7 + $0x8] sm:$0xff]  ;;  %v350_v37 = vld [vmem:[#allocation7] sm:$0xff]  ;;  %v2698_v39 = vrot.slane %v2685_v9, %v983_v35  ;;  %p2367_p4 = scmp.ne.s32.totalorder %s3584_s9, %s2366_s2  ;;  %s2452_s10 = smov [#allocation10]  }
  0x78   : > { %1950 = vmatprep.subr.mxu0 %v361_v14  ;;  %1982 = vmatpush3.msra.mxu1 %v467_v18  ;;  %v460_v38 = vld [vmem:[#allocation8 + $0x30] sm:$0xff]  ;;  %v348_v40 = vld [vmem:[%s2657_s17 + $0x8] sm:$0xff]  ;;  %v458_v42 = vld [vmem:[#allocation8 + $0x20] sm:$0xff]  ;;  %v2705_v44 = vrot.slane %v2685_v9, %v1002_v43  ;;  %v2711_v48 = vrot.slane %v2685_v9, %v1021_v46  ;;  %v1041_v52 = vrot.slane %v2685_v9, %v1040_v51  ;;  %s3582_s17 = scalar_lea.hbm %s3638_s7, %s1905_s21  ;;  %s2370_s12 = sshll.u32 %s2452_s10, 4  ;;  %s2371_s12 = int_to_ptr.vmem [resolvable:$false] %s2370_s12 }
  0x79   : > { %948 = vbcast.lane.b32.xlu0 %v946_v10, 256  ;;  %956 = vbcast.lane.b32.xlu1 %v946_v10, 272  ;;  %v459_v41 = vld [vmem:[#allocation8 + $0x28] sm:$0xff]  ;;  %v457_v45 = vld [vmem:[#allocation8 + $0x18] sm:$0xff]  ;;  %v456_v47 = vld [vmem:[#allocation8 + $0x10] sm:$0xff]  ;;  %v1060_v56 = vrot.slane %v2685_v9, %v1059_v53  ;;  %v558_v57 = vadd.s32 %v2672_v1, %v554_v55  ;;  %v1079_v58 = vrot.slane %v2685_v9, %v1078_v54  ;;  %p2368_p8 = pnand %p2367_p4, %p3767_p2  ;;  %s2372_s15 = scalar_lea.vmem %s2371_s12, 16384 }
  0x7a   : > { %1951 = vmatpush3.msra.mxu0 %v361_v14  ;;  %1983 = vmatprep.subr.mxu1 %v466_v20  ;;  %v455_v49 = vld [vmem:[#allocation8 + $0x8] sm:$0xff]  ;;  %v454_v50 = vld [vmem:[#allocation8] sm:$0xff]  ;;  %p2373_p3 = scmp.lt.s32.totalorder %s3584_s9, %s2371_s12  ;;  %p2374_p10 = scmp.lt.s32.totalorder %s2372_s15, %s2366_s2 }
  0x7b   : > { %1952 = vmatprep.subr.mxu0 %v360_v17  ;;  %1984 = vmatpush3.msra.mxu1 %v466_v20  ;;  %vm562_vm1 = vcmp.eq.s32.totalorder %v558_v57, %v2676_v3  ;;  %v1893_v6 = vld [vmem:[%s3634_s3] ss:$0 sm:$0xff]  ;;  %p2369_p9 = pneg %p2368_p8 }
  0x7c   : > { %1953 = vmatpush3.msra.mxu0 %v360_v17  ;;  %1985 = vmatprep.subr.mxu1 %v465_v22  ;;  %v564_v59 = vsel %vm562_vm1, -inf, %v2450_v8  ;;  %v1894_v57 = vld [vmem:[%s3636_s5] ss:$0 sm:$0xff]  ;;  %p2375_p6 = por %p2374_p10, %p2373_p3 }
  0x7d   : > { %1954 = vmatprep.subr.mxu0 %v359_v19  ;;  %952 = vbcast.lane.b32.xlu0 %v946_v10, 264  ;;  %v1098_v60 = vrot.slane %v564_v59, %v2681_v5  ;;  %v1117_v61 = vrot.slane %v564_v59, %v964_v23  ;;  %v1136_v62 = vrot.slane %v564_v59, %v983_v35 }
  0x7e   : > { %1955 = vmatpush3.msra.mxu0 %v359_v19  ;;  %1986 = vmatpush3.msra.mxu1 %v465_v22  ;;  %v1155_v63 = vrot.slane %v564_v59, %v1002_v43  ;;  %v1174_v0 = vrot.slane %v564_v59, %v1021_v46  ;;  %v1193_v1 = vrot.slane %v564_v59, %v1040_v51  ;;  %p2376_p1 = pnand %p2375_p6, %p2369_p9 }
  0x7f   : > { %1956 = vmatprep.subr.mxu0 %v358_v21  ;;  %960 = vbcast.lane.b32.xlu1 %v946_v10, 280  ;;  %v1212_v3 = vrot.slane %v564_v59, %v1059_v53  ;;  %v1231_v4 = vrot.slane %v564_v59, %v1078_v54 }
  0x80   : > { %1957 = vmatpush3.msra.mxu0 %v358_v21  ;;  %1987 = vmatprep.subr.mxu1 %v464_v26 }
  0x81   : > { %1958 = vmatprep.subr.mxu0 %v357_v24  ;;  %1988 = vmatpush3.msra.mxu1 %v464_v26 }
  0x82   : > { %1959 = vmatpush3.msra.mxu0 %v357_v24  ;;  %967 = vbcast.lane.b32.xlu0 %v965_v27, 256 }
  0x83   : > { %1960 = vmatprep.subr.mxu0 %v356_v25  ;;  %1989 = vmatprep.subr.mxu1 %v463_v29 }
  0x84   : > { %1961 = vmatpush3.msra.mxu0 %v356_v25  ;;  %1990 = vmatpush3.msra.mxu1 %v463_v29 }
  0x85   : > { %1962 = vmatprep.subr.mxu0 %v355_v28  ;;  %971 = vbcast.lane.b32.xlu1 %v965_v27, 264 }
  0x86   : > { %1963 = vmatpush3.msra.mxu0 %v355_v28  ;;  %1991 = vmatprep.subr.mxu1 %v462_v32 }
  0x87   : > { %1964 = vmatprep.subr.mxu0 %v354_v30  ;;  %1992 = vmatpush3.msra.mxu1 %v462_v32 }
  0x88   : > { %1965 = vmatpush3.msra.mxu0 %v354_v30  ;;  %975 = vbcast.lane.b32.xlu0 %v965_v27, 272 }
  0x89   : > { %1966 = vmatprep.subr.mxu0 %v353_v31  ;;  %1993 = vmatprep.subr.mxu1 %v461_v34 }
  0x8a   : > { %1967 = vmatpush3.msra.mxu0 %v353_v31  ;;  %1994 = vmatpush3.msra.mxu1 %v461_v34 }
  0x8b   : > { %1968 = vmatprep.subr.mxu0 %v352_v33  ;;  %979 = vbcast.lane.b32.xlu1 %v965_v27, 280 }
  0x8c   : > { %1969 = vmatpush3.msra.mxu0 %v352_v33  ;;  %1995 = vmatprep.subr.mxu1 %v460_v38 }
  0x8d   : > { %1970 = vmatprep.subr.mxu0 %v351_v36  ;;  %1996 = vmatpush3.msra.mxu1 %v460_v38 }
  0x8e   : > { %1971 = vmatpush3.msra.mxu0 %v351_v36  ;;  %986 = vbcast.lane.b32.xlu0 %v2698_v39, 256 }
  0x8f   : > { %1972 = vmatprep.subr.mxu0 %v350_v37  ;;  %1997 = vmatprep.subr.mxu1 %v459_v41 }
  0x90   : > { %1973 = vmatpush3.msra.mxu0 %v350_v37  ;;  %990 = vbcast.lane.b32.xlu1 %v2698_v39, 264 }
  0x91   : > { %1975 = vmatmul.mubr.f32.vlgmr.msra.gmra.mxu0 %v348_v40  ;;  %1998 = vmatpush3.msra.mxu1 %v459_v41 }
  0x92   : > { %1999 = vmatprep.subr.mxu1 %v458_v42  ;;  %1005 = vbcast.lane.b32.xlu0 %v2705_v44, 256 }
  0x93   : > { %2000 = vmatpush3.msra.mxu1 %v458_v42 }
  0x94   : > { %2001 = vmatprep.subr.mxu1 %v457_v45  ;;  %1009 = vbcast.lane.b32.xlu1 %v2705_v44, 264 }
  0x95   : > { %2002 = vmatpush3.msra.mxu1 %v457_v45 }
  0x96   : > { %2003 = vmatprep.subr.mxu1 %v456_v47  ;;  %1024 = vbcast.lane.b32.xlu0 %v2711_v48, 256 }
  0x97   : > { %2004 = vmatpush3.msra.mxu1 %v456_v47 }
  0x98   : > { %2005 = vmatprep.subr.mxu1 %v455_v49  ;;  %1028 = vbcast.lane.b32.xlu1 %v2711_v48, 264 }
  0x99   : > { %2006 = vmatpush3.msra.mxu1 %v455_v49 }
  0x9a   : > { %2007 = vmatprep.subr.mxu1 %v454_v50  ;;  %1043 = vbcast.lane.b32.xlu0 %v1041_v52, 256 }
  0x9b   : > { %2008 = vmatpush3.msra.mxu1 %v454_v50 }
  0x9c   : > { %1047 = vbcast.lane.b32.xlu1 %v1041_v52, 264 }
  0x9e   : > { %1062 = vbcast.lane.b32.xlu0 %v1060_v56, 256 }
  0xa0   : > { %1066 = vbcast.lane.b32.xlu1 %v1060_v56, 264 }
  0xa2   : > { %1081 = vbcast.lane.b32.xlu0 %v1079_v58, 256 }
  0xa4   : > { %1085 = vbcast.lane.b32.xlu1 %v1079_v58, 264 }
  0xa6   : > { %1100 = vbcast.lane.b32.xlu0 %v1098_v60, 256 }
  0xa8   : > { %1104 = vbcast.lane.b32.xlu1 %v1098_v60, 264 }
  0xaa   : > { %1119 = vbcast.lane.b32.xlu0 %v1117_v61, 256 }
  0xac   : > { %1123 = vbcast.lane.b32.xlu1 %v1117_v61, 264 }
  0xae   : > { %1138 = vbcast.lane.b32.xlu0 %v1136_v62, 256 }
  0xb0   : > { %1142 = vbcast.lane.b32.xlu1 %v1136_v62, 264 }
  0xb2   : > { %1157 = vbcast.lane.b32.xlu0 %v1155_v63, 256 }
  0xb4   : > { %1161 = vbcast.lane.b32.xlu1 %v1155_v63, 264 }
  0xb6   : > { %1176 = vbcast.lane.b32.xlu0 %v1174_v0, 256 }
  0xb8   : > { %1180 = vbcast.lane.b32.xlu1 %v1174_v0, 264 }
  0xba   : > { %1195 = vbcast.lane.b32.xlu0 %v1193_v1, 256 }
  0xbc   : > { %1199 = vbcast.lane.b32.xlu1 %v1193_v1, 264 }
  0xbe   : > { %1214 = vbcast.lane.b32.xlu0 %v1212_v3, 256 }
  0xc0   : > { %1218 = vbcast.lane.b32.xlu1 %v1212_v3, 264 }
  0xc2   : > { %1233 = vbcast.lane.b32.xlu0 %v1231_v4, 256 }
  0xc4   : > { %1237 = vbcast.lane.b32.xlu1 %v1231_v4, 264 }
  0xc6   : > { %994 = vbcast.lane.b32.xlu0 %v2698_v39, 272 }
  0xc8   : > { %1013 = vbcast.lane.b32.xlu1 %v2705_v44, 272 }
  0xca   : > { %1032 = vbcast.lane.b32.xlu0 %v2711_v48, 272 }
  0xcc   : > { %1051 = vbcast.lane.b32.xlu1 %v1041_v52, 272 }
  0xce   : > { %1070 = vbcast.lane.b32.xlu0 %v1060_v56, 272 }
  0xd0   : > { %1089 = vbcast.lane.b32.xlu1 %v1079_v58, 272 }
  0xd2   : > { %1108 = vbcast.lane.b32.xlu0 %v1098_v60, 272 }
  0xd4   : > { %1127 = vbcast.lane.b32.xlu1 %v1117_v61, 272 }
  0xd6   : > { %1146 = vbcast.lane.b32.xlu0 %v1136_v62, 272 }
  0xd8   : > { %1165 = vbcast.lane.b32.xlu1 %v1155_v63, 272 }
  0xda   : > { %1184 = vbcast.lane.b32.xlu0 %v1174_v0, 272 }
  0xdc   : > { %1203 = vbcast.lane.b32.xlu1 %v1193_v1, 272 }
  0xde   : > { %1222 = vbcast.lane.b32.xlu0 %v1212_v3, 272 }
  0xe0   : > { %1241 = vbcast.lane.b32.xlu1 %v1231_v4, 272 }
  0xe2   : > { %998 = vbcast.lane.b32.xlu0 %v2698_v39, 280 }
  0xe4   : > { %1017 = vbcast.lane.b32.xlu1 %v2705_v44, 280 }
  0xe6   : > { %1036 = vbcast.lane.b32.xlu0 %v2711_v48, 280 }
  0xe8   : > { %1055 = vbcast.lane.b32.xlu1 %v1041_v52, 280  ;;  %v2451_v52 = vmov 1966171168  }
  0xe9   : > { %v569_v53 = vunpack.c.l.s4 %v2451_v52 }
  0xea   : > { %1074 = vbcast.lane.b32.xlu0 %v1060_v56, 280 }
  0xeb   : > { %v2739_v15 = vpop.permute.xlu0 %948  ;;  %v2741_v16 = vpop.permute.xlu1 %956  ;;  %v570_v56 = vunpack.c.0.s8 %v569_v53 }
  0xec   : > { %1093 = vbcast.lane.b32.xlu1 %v1079_v58, 280 }
  0xed   : > { %v573_v58 = vsub.s32 %v570_v56, %v2674_v2 }
  0xee   : > { %1112 = vbcast.lane.b32.xlu0 %v1098_v60, 280 }
  0xef   : > { %v2743_v17 = vpop.permute.xlu0 %952 }
  0xf0   : > { %1131 = vbcast.lane.b32.xlu1 %v1117_v61, 280 }
  0xf1   : > { %v2745_v18 = vpop.permute.xlu1 %960 }
  0xf2   : > { %1150 = vbcast.lane.b32.xlu0 %v1136_v62, 280 }
  0xf4   : > { %1169 = vbcast.lane.b32.xlu1 %v1155_v63, 280  ;;  %v2747_v19 = vpop.permute.xlu0 %967 }
  0xf6   : > { %1188 = vbcast.lane.b32.xlu0 %v1174_v0, 280 }
  0xf7   : > { %v2749_v20 = vpop.permute.xlu1 %971 }
  0xf8   : > { %1207 = vbcast.lane.b32.xlu1 %v1193_v1, 280 }
  0xfa   : > { %1226 = vbcast.lane.b32.xlu0 %v1212_v3, 280  ;;  %v2751_v21 = vpop.permute.xlu0 %975 }
  0xfc   : > { %1245 = vbcast.lane.b32.xlu1 %v1231_v4, 280 }
  0xfd   : > { %v2753_v22 = vpop.permute.xlu1 %979 }
 0x100   : > { %v2755_v23 = vpop.permute.xlu0 %986 }
 0x102   : > { %v2757_v24 = vpop.permute.xlu1 %990 }
 0x104   : > { %v2759_v25 = vpop.permute.xlu0 %1005 }
 0x106   : > { %v2761_v26 = vpop.permute.xlu1 %1009 }
 0x108   : > { %v2763_v27 = vpop.permute.xlu0 %1024 }
 0x10a   : > { %v2765_v28 = vpop.permute.xlu1 %1028 }
 0x10c   : > { %v2767_v29 = vpop.permute.xlu0 %1043 }
 0x10d   : > { %3678 = vst [vmem:[#allocation17_spill] sm:$0xff] %v2767_v29 }
 0x10e   : > { %v2769_v30 = vpop.permute.xlu1 %1047 }
 0x10f   : > { %3679 = vst [vmem:[#allocation18_spill] sm:$0xff] %v2769_v30 }
 0x110   : > { %v2771_v31 = vpop.permute.xlu0 %1062 }
 0x111   : > { %3680 = vst [vmem:[#allocation19_spill] sm:$0xff] %v2771_v31 }
 0x112   : > { %v2773_v32 = vpop.permute.xlu1 %1066 }
 0x113   : > { %3681 = vst [vmem:[#allocation20_spill] sm:$0xff] %v2773_v32 }
 0x114   : > { %v2775_v33 = vpop.permute.xlu0 %1081 }
 0x115   : > { %3682 = vst [vmem:[#allocation21_spill] sm:$0xff] %v2775_v33 }
 0x116   : > { %v2777_v34 = vpop.permute.xlu1 %1085 }
 0x117   : > { %3683 = vst [vmem:[#allocation22_spill] sm:$0xff] %v2777_v34 }
 0x118   : > { %v2779_v35 = vpop.permute.xlu0 %1100 }
 0x119   : > { %3684 = vst [vmem:[#allocation23_spill] sm:$0xff] %v2779_v35 }
 0x11a   : > { %v2781_v36 = vpop.permute.xlu1 %1104 }
 0x11b   : > { %3685 = vst [vmem:[#allocation24_spill] sm:$0xff] %v2781_v36 }
 0x11c   : > { %v2783_v37 = vpop.permute.xlu0 %1119 }
 0x11d   : > { %3686 = vst [vmem:[#allocation25_spill] sm:$0xff] %v2783_v37 }
 0x11e   : > { %v2785_v38 = vpop.permute.xlu1 %1123 }
 0x11f   : > { %3687 = vst [vmem:[#allocation26_spill] sm:$0xff] %v2785_v38 }
 0x120   : > { %v2787_v39 = vpop.permute.xlu0 %1138 }
 0x121   : > { %3688 = vst [vmem:[#allocation27_spill] sm:$0xff] %v2787_v39 }
 0x122   : > { %v2789_v40 = vpop.permute.xlu1 %1142 }
 0x123   : > { %3689 = vst [vmem:[#allocation28_spill] sm:$0xff] %v2789_v40 }
 0x124   : > { %v2791_v41 = vpop.permute.xlu0 %1157 }
 0x125   : > { %3690 = vst [vmem:[#allocation29_spill] sm:$0xff] %v2791_v41 }
 0x126   : > { %v2793_v42 = vpop.permute.xlu1 %1161 }
 0x127   : > { %3691 = vst [vmem:[#allocation30_spill] sm:$0xff] %v2793_v42 }
 0x128   : > { %v2795_v43 = vpop.permute.xlu0 %1176 }
 0x129   : > { %3692 = vst [vmem:[#allocation31_spill] sm:$0xff] %v2795_v43 }
 0x12a   : > { %v2797_v44 = vpop.permute.xlu1 %1180 }
 0x12b   : > { %3693 = vst [vmem:[#allocation32_spill] sm:$0xff] %v2797_v44 }
 0x12c   : > { %v2799_v45 = vpop.permute.xlu0 %1195 }
 0x12d   : > { %3694 = vst [vmem:[#allocation33_spill] sm:$0xff] %v2799_v45  ;;  %v2869_v45 = vld [vmem:[#allocation2 + $0x10] sm:$0xff] }
 0x12e   : > { %v2801_v46 = vpop.permute.xlu1 %1199  ;;  %3715 = vst [vmem:[#allocation54_spill] sm:$0xff] %v2869_v45 }
 0x12f   : > { %3695 = vst [vmem:[#allocation34_spill] sm:$0xff] %v2801_v46 }
 0x130   : > { %v2803_v47 = vpop.permute.xlu0 %1214 }
 0x131   : > { %3696 = vst [vmem:[#allocation35_spill] sm:$0xff] %v2803_v47 }
 0x132   : > { %v2805_v48 = vpop.permute.xlu1 %1218 }
 0x133   : > { %3697 = vst [vmem:[#allocation36_spill] sm:$0xff] %v2805_v48 }
 0x134   : > { %v2807_v49 = vpop.permute.xlu0 %1233 }
 0x135   : > { %3698 = vst [vmem:[#allocation37_spill] sm:$0xff] %v2807_v49 }
 0x136   : > { %v2809_v50 = vpop.permute.xlu1 %1237 }
 0x137   : > { %3699 = vst [vmem:[#allocation38_spill] sm:$0xff] %v2809_v50 }
 0x138   : > { %v2811_v51 = vpop.permute.xlu0 %994 }
 0x13a   : > { %v2813_v54 = vpop.permute.xlu1 %1013 }
 0x13c   : > { %v2815_v55 = vpop.permute.xlu0 %1032 }
 0x13e   : > { %v2821_v59 = vpop.permute.xlu1 %1051 }
 0x13f   : > { %3700 = vst [vmem:[#allocation39_spill] sm:$0xff] %v2821_v59 }
 0x140   : > { %v2823_v61 = vpop.permute.xlu0 %1070 }
 0x141   : > { %3701 = vst [vmem:[#allocation40_spill] sm:$0xff] %v2823_v61 }
 0x151   : > { %v1976_v7 = vpop.f32.mrf.mxu0 }
 0x152   : > { %v445_v8 = vadd.f32 %v1976_v7, %v1893_v6 }
 0x153   : > { %v439_v9 = vpop.f32.mrf.mxu0 }
 0x154   : > { %v440_v10 = vadd.f32 %v1893_v6, %v439_v9  ;;  %v451_v11 = vmul.f32 0.01, %v445_v8  ;;  %vm449_vm3 = vcmp.gt.f32.partialorder %v445_v8, 0.0  ;;  %v2825_v9 = vpop.permute.xlu1 %1089 }
 0x155   : > { %3702 = vst [vmem:[#allocation41_spill] sm:$0xff] %v2825_v9 }
 0x156   : > { %vm448_vm2 = vcmp.gt.f32.partialorder %v440_v10, 0.0  ;;  %v450_v12 = vmul.f32 0.01, %v440_v10  ;;  %v453_v14 = vsel %vm449_vm3, %v445_v8, %v451_v11  ;;  %v2827_v11 = vpop.permute.xlu0 %1108 }
 0x157   : > { %3703 = vst [vmem:[#allocation42_spill] sm:$0xff] %v2827_v11 }
 0x158   : > { %v452_v13 = vsel %vm448_vm2, %v440_v10, %v450_v12 }
 0x159   : > { %2009 = vmatprep.mubr.f32.mxu1 %v452_v13 }
 0x15a   : > { %2010 = vmatmul.mubr.f32.vlgmr.msra.gmra.mxu1 %v453_v14  ;;  %v2854_v47 = vpop.permute.xlu0 %1146 }
 0x15b   : > { %3713 = vst [vmem:[#allocation52_spill] sm:$0xff] %v2854_v47 }
 0x21a   : > { %v2011_v60 = vpop.f32.mrf.mxu1 }
 0x21b   : > { %v549_v62 = vadd.f32 %v2011_v60, %v1894_v57 }
 0x21c   : > { %v543_v63 = vpop.f32.mrf.mxu1 }
 0x21d   : > { %v616_v0 = vcombine.high %v549_v62, %v549_v62  ;;  %v623_v1 = vrot.slane %v549_v62, %v573_v58  ;;  %v544_v3 = vadd.f32 %v1894_v57, %v543_v63 }
 0x21f   : > { %v630_v4 = vrot.slane %v616_v0, %v573_v58  ;;  %v631_v6 = vcombine.high %v623_v1, %v623_v1  ;;  %v639_v7 = vrot.slane %v623_v1, %v573_v58  ;;  %v567_v8 = vcombine.high %v544_v3, %v544_v3 }
 0x220   : > { %v574_v10 = vrot.slane %v544_v3, %v573_v58 }
 0x221   : > { %v632_v2 = vcombine.high %v630_v4, %v630_v4  ;;  %v646_v12 = vrot.slane %v630_v4, %v573_v58  ;;  %v653_v13 = vrot.slane %v631_v6, %v573_v58  ;;  %v661_v14 = vcombine.high %v639_v7, %v639_v7  ;;  %v2841_v4 = vld [vmem:[#allocation2] sm:$0xff] }
 0x222   : > { %v2830_v52 = vrot.slane %v639_v7, %v2681_v5  ;;  %v581_v53 = vrot.slane %v567_v8, %v573_v58  ;;  %v582_v56 = vcombine.high %v574_v10, %v574_v10  ;;  %v590_v60 = vrot.slane %v574_v10, %v573_v58  ;;  %3708 = vst [vmem:[#allocation47_spill] sm:$0xff] %v2841_v4 }
 0x223   : > { %v660_v57 = vrot.slane %v632_v2, %v573_v58  ;;  %v662_v62 = vcombine.high %v646_v12, %v646_v12  ;;  %v663_v63 = vcombine.high %v653_v13, %v653_v13  ;;  %v2833_v0 = vrot.slane %v653_v13, %v2681_v5  ;;  %v2852_v13 = vpop.permute.xlu1 %1127 }
 0x224   : > { %3704 = vst [vmem:[#allocation43_spill] sm:$0xff] %v2830_v52  ;;  %v2836_v1 = vrot.slane %v661_v14, %v2681_v5  ;;  %v2839_v3 = vrot.slane %v646_v12, %v2681_v5  ;;  %v583_v6 = vcombine.high %v581_v53, %v581_v53  ;;  %v597_v7 = vrot.slane %v581_v53, %v573_v58 }
 0x225   : > { %3705 = vst [vmem:[#allocation44_spill] sm:$0xff] %v2833_v0  ;;  %v664_v50 = vcombine.high %v660_v57, %v660_v57  ;;  %v2844_v8 = vrot.slane %v663_v63, %v2681_v5  ;;  %v2847_v10 = vrot.slane %v660_v57, %v2681_v5  ;;  %v2850_v2 = vrot.slane %v662_v62, %v2681_v5  ;;  %v2865_v62 = vld [vmem:[#allocation2 + $0x8] sm:$0xff] }
 0x226   : > { %3706 = vst [vmem:[#allocation45_spill] sm:$0xff] %v2836_v1  ;;  %3707 = vst [vmem:[#allocation46_spill] sm:$0xff] %v2839_v3  ;;  %v604_v14 = vrot.slane %v582_v56, %v573_v58  ;;  %v611_v49 = vrot.slane %v583_v6, %v573_v58  ;;  %v612_v12 = vcombine.high %v590_v60, %v590_v60  ;;  %v2922_v1 = vld [vmem:[%s3637_s6] ss:$0 sm:$0xff] }
 0x227   : > { %3709 = vst [vmem:[#allocation48_spill] sm:$0xff] %v2844_v8  ;;  %3710 = vst [vmem:[#allocation49_spill] sm:$0xff] %v2847_v10  ;;  %v613_v48 = vcombine.high %v597_v7, %v597_v7  ;;  %v2857_v53 = vrot.slane %v664_v50, %v2681_v5  ;;  %v668_v63 = vrot.slane %v590_v60, %v2681_v5  ;;  %v2871_v50 = vld [vmem:[#allocation2 + $0x18] sm:$0xff]  ;;  %v2891_v41 = vpop.permute.xlu1 %1165  ;;  %v2897_v8 = vpop.permute.xlu0 %1184 }
 0x228   : > { %3711 = vst [vmem:[#allocation50_spill] sm:$0xff] %v2850_v2  ;;  %3712 = vst [vmem:[#allocation51_spill] sm:$0xff] %v2852_v13  ;;  %v2861_v46 = vrot.slane %v597_v7, %v2681_v5  ;;  %v614_v2 = vcombine.high %v604_v14, %v604_v14  ;;  %v615_v56 = vcombine.high %v611_v49, %v611_v49 }
 0x229   : > { %3714 = vst [vmem:[#allocation53_spill] sm:$0xff] %v2857_v53  ;;  %v672_v58 = vrot.slane %v604_v14, %v2681_v5  ;;  %v676_v6 = vrot.slane %v612_v12, %v2681_v5  ;;  %3716 = vst [vmem:[#allocation55_spill] sm:$0xff] %v2871_v50  ;;  %v2874_v60 = vrot.slane %v611_v49, %v2681_v5 }
 0x22a   : > { %v2877_v7 = vrot.slane %v613_v48, %v2681_v5  ;;  %v745_v57 = vsub.f32 %v2841_v4, %v668_v63  ;;  %v746_v53 = vsub.f32 %v2865_v62, %v668_v63  ;;  %v680_v44 = vrot.slane %v614_v2, %v2681_v5  ;;  %3717 = vst [vmem:[#allocation56_spill] sm:$0xff] %v2891_v41 }
 0x22b   : > { %v2883_v14 = vrot.slane %v615_v56, %v2681_v5  ;;  %v747_v12 = vsub.f32 %v2869_v45, %v668_v63  ;;  %v748_v43 = vsub.f32 %v2871_v50, %v668_v63  ;;  %v749_v10 = vsub.f32 %v2841_v4, %v672_v58  ;;  %3718 = vst [vmem:[#allocation57_spill] sm:$0xff] %v2897_v8  ;;  %v2934_v33 = vpop.permute.xlu1 %1203  ;;  %v2938_v59 = vpop.permute.xlu0 %1222 }
 0x22c   : > { %v750_v49 = vsub.f32 %v2865_v62, %v672_v58  ;;  %v751_v48 = vsub.f32 %v2869_v45, %v672_v58  ;;  %v752_v42 = vsub.f32 %v2871_v50, %v672_v58  ;;  %v753_v3 = vsub.f32 %v2841_v4, %v676_v6  ;;  %3719 = vst [vmem:[#allocation58_spill] sm:$0xff] %v2934_v33 }
 0x22d   : > { %v754_v2 = vsub.f32 %v2865_v62, %v676_v6  ;;  %v755_v5 = vsub.f32 %v2869_v45, %v676_v6  ;;  %v756_v56 = vsub.f32 %v2871_v50, %v676_v6  ;;  %v757_v63 = vsub.f32 %v2841_v4, %v680_v44  ;;  %3720 = vst [vmem:[#allocation59_spill] sm:$0xff] %v2938_v59 }
 0x22e   : > { %v758_v47 = vsub.f32 %v2865_v62, %v680_v44  ;;  %v759_v40 = vsub.f32 %v2869_v45, %v680_v44  ;;  %v760_v58 = vsub.f32 %v2871_v50, %v680_v44  ;;  %v761_v41 = vsub.f32 %v2841_v4, %v2861_v46 }
 0x22f   : > { %v762_v39 = vsub.f32 %v2865_v62, %v2861_v46  ;;  %v763_v13 = vsub.f32 %v2869_v45, %v2861_v46  ;;  %v764_v6 = vsub.f32 %v2871_v50, %v2861_v46  ;;  %v765_v8 = vsub.f32 %v2841_v4, %v2874_v60 }
 0x230   : > { %v766_v38 = vsub.f32 %v2865_v62, %v2874_v60  ;;  %v767_v44 = vsub.f32 %v2869_v45, %v2874_v60  ;;  %v768_v37 = vsub.f32 %v2871_v50, %v2874_v60  ;;  %v769_v46 = vsub.f32 %v2841_v4, %v2877_v7 }
 0x231   : > { %v770_v11 = vsub.f32 %v2865_v62, %v2877_v7  ;;  %v771_v36 = vsub.f32 %v2869_v45, %v2877_v7  ;;  %v772_v35 = vsub.f32 %v2871_v50, %v2877_v7  ;;  %v809_v0 = vand.u32 2147483647, %v745_v57 }
 0x232   : > { %v810_v9 = vand.u32 2147483647, %v746_v53  ;;  %v811_v60 = vand.u32 2147483647, %v747_v12  ;;  %v812_v52 = vand.u32 2147483647, %v748_v43 }
 0x233   : > { %v813_v61 = vand.u32 2147483647, %v749_v10  ;;  %v814_v32 = vand.u32 2147483647, %v750_v49  ;;  %v815_v45 = vand.u32 2147483647, %v751_v48  ;;  %v879_v57 = vmul.f32 %v2922_v1, %v809_v0 }
 0x234   : > { %v816_v30 = vand.u32 2147483647, %v752_v42  ;;  %v817_v29 = vand.u32 2147483647, %v753_v3  ;;  %v818_v53 = vand.u32 2147483647, %v754_v2  ;;  %v880_v34 = vmul.f32 %v2922_v1, %v810_v9  ;;  %v2945_v2 = vpop.permute.xlu1 %1241 }
 0x235   : > { %v819_v7 = vand.u32 2147483647, %v755_v5  ;;  %v820_v12 = vand.u32 2147483647, %v756_v56  ;;  %v821_v4 = vand.u32 2147483647, %v757_v63  ;;  %v881_v10 = vmul.f32 %v2922_v1, %v811_v60 }
 0x236   : > { %v822_v33 = vand.u32 2147483647, %v758_v47  ;;  %v823_v43 = vand.u32 2147483647, %v759_v40  ;;  %v824_v49 = vand.u32 2147483647, %v760_v58  ;;  %v882_v59 = vmul.f32 %v2922_v1, %v812_v52  ;;  %v999_v40 = vpop.permute.xlu0 %998 }
 0x237   : > { %v825_v50 = vand.u32 2147483647, %v761_v41  ;;  %v826_v31 = vand.u32 2147483647, %v762_v39  ;;  %v827_v48 = vand.u32 2147483647, %v763_v13  ;;  %v883_v0 = vmul.f32 %v2922_v1, %v813_v61 }
 0x238   : > { %v828_v42 = vand.u32 2147483647, %v764_v6  ;;  %v829_v3 = vand.u32 2147483647, %v765_v8  ;;  %v830_v5 = vand.u32 2147483647, %v766_v38  ;;  %v884_v47 = vmul.f32 %v2922_v1, %v814_v32 }
 0x239   : > { %v831_v56 = vand.u32 2147483647, %v767_v44  ;;  %v832_v9 = vand.u32 2147483647, %v768_v37  ;;  %v833_v63 = vand.u32 2147483647, %v769_v46  ;;  %v885_v39 = vmul.f32 %v2922_v1, %v815_v45  ;;  %v1018_v46 = vpop.permute.xlu1 %1017 }
 0x23a   : > { %v834_v60 = vand.u32 2147483647, %v770_v11  ;;  %v835_v58 = vand.u32 2147483647, %v771_v36  ;;  %v836_v41 = vand.u32 2147483647, %v772_v35  ;;  %v886_v52 = vmul.f32 %v2922_v1, %v816_v30 }
 0x23b   : > { %v887_v8 = vmul.f32 %v2922_v1, %v817_v29  ;;  %v888_v61 = vmul.f32 %v2922_v1, %v818_v53  ;;  %v889_v13 = vmul.f32 %v2922_v1, %v819_v7  ;;  %v890_v38 = vmul.f32 %v2922_v1, %v820_v12 }
 0x23c   : > { %v891_v37 = vmul.f32 %v2922_v1, %v821_v4  ;;  %v892_v32 = vmul.f32 %v2922_v1, %v822_v33  ;;  %v893_v11 = vmul.f32 %v2922_v1, %v823_v43  ;;  %v894_v36 = vmul.f32 %v2922_v1, %v824_v49 }
 0x23d   : > { %v895_v35 = vmul.f32 %v2922_v1, %v825_v50  ;;  %v896_v30 = vmul.f32 %v2922_v1, %v826_v31  ;;  %v897_v29 = vmul.f32 %v2922_v1, %v827_v48  ;;  %v898_v45 = vmul.f32 %v2922_v1, %v828_v42  ;;  %v1037_v50 = vpop.permute.xlu0 %1036 }
 0x23e   : > { %v899_v6 = vmul.f32 %v2922_v1, %v829_v3  ;;  %v900_v44 = vmul.f32 %v2922_v1, %v830_v5  ;;  %v901_v4 = vmul.f32 %v2922_v1, %v831_v56  ;;  %v902_v33 = vmul.f32 %v2922_v1, %v832_v9  ;;  %v3723_v9 = vld [vmem:[#allocation39_spill] sm:$0xff] }
 0x23f   : > { %v903_v53 = vmul.f32 %v2922_v1, %v833_v63  ;;  %v904_v7 = vmul.f32 %v2922_v1, %v834_v60  ;;  %v905_v31 = vmul.f32 %v2922_v1, %v835_v58  ;;  %v906_v12 = vmul.f32 %v2922_v1, %v836_v41  ;;  %v3725_v63 = vld [vmem:[#allocation20_spill] sm:$0xff] }
 0x240   : > { %v2971_v43 = vadd.f32 %v2739_v15, %v879_v57  ;;  %v2974_v49 = vadd.f32 %v2743_v17, %v880_v34  ;;  %v2977_v48 = vadd.f32 %v2741_v16, %v881_v10  ;;  %v2980_v42 = vadd.f32 %v2745_v18, %v882_v59  ;;  %v3721_v57 = vld [vmem:[#allocation17_spill] sm:$0xff]  ;;  %v3722_v10 = vld [vmem:[#allocation18_spill] sm:$0xff]  ;;  %v3726_v60 = vld [vmem:[#allocation40_spill] sm:$0xff] }
 0x241   : > { %v2983_v3 = vadd.f32 %v2747_v19, %v883_v0  ;;  %v2986_v5 = vadd.f32 %v2749_v20, %v884_v47  ;;  %v2989_v56 = vadd.f32 %v2751_v21, %v885_v39  ;;  %v2992_v15 = vadd.f32 %v2753_v22, %v886_v52  ;;  %v1075_v0 = vpop.permute.xlu0 %1074 }
 0x242   : > { %v2995_v17 = vadd.f32 %v2755_v23, %v887_v8  ;;  %v2998_v16 = vadd.f32 %v2757_v24, %v888_v61  ;;  %v3001_v18 = vadd.f32 %v2811_v51, %v889_v13  ;;  %v3003_v19 = vadd.f32 %v999_v40, %v890_v38  ;;  %v1056_v51 = vpop.permute.xlu1 %1055 }
 0x243   : > { %v3006_v20 = vadd.f32 %v2759_v25, %v891_v37  ;;  %v3009_v21 = vadd.f32 %v2761_v26, %v892_v32  ;;  %v3012_v22 = vadd.f32 %v2813_v54, %v893_v11  ;;  %v3014_v34 = vadd.f32 %v1018_v46, %v894_v36  ;;  %v3727_v36 = vld [vmem:[#allocation54_spill] sm:$0xff] }
 0x244   : > { %v3017_v23 = vadd.f32 %v2763_v27, %v895_v35  ;;  %v3020_v24 = vadd.f32 %v2765_v28, %v896_v30  ;;  %v3023_v59 = vadd.f32 %v2815_v55, %v897_v29  ;;  %v3025_v25 = vadd.f32 %v1037_v50, %v898_v45  ;;  %v3724_v28 = vld [vmem:[#allocation19_spill] sm:$0xff] }
 0x245   : > { %v3028_v26 = vadd.f32 %v3721_v57, %v899_v6  ;;  %v3031_v54 = vadd.f32 %v3722_v10, %v900_v44  ;;  %v3034_v47 = vadd.f32 %v3723_v9, %v901_v4  ;;  %v3036_v27 = vadd.f32 %v1056_v51, %v902_v33  ;;  %v3728_v33 = vld [vmem:[#allocation55_spill] sm:$0xff] }
 0x246   : > { %v3039_v40 = vadd.f32 %v3724_v28, %v903_v53  ;;  %v3042_v55 = vadd.f32 %v3725_v63, %v904_v7  ;;  %v3045_v58 = vadd.f32 %v3726_v60, %v905_v31  ;;  %v3047_v39 = vadd.f32 %v1075_v0, %v906_v12 }
 0x247   : > { %v1311_v41 = vmax.f32 %v2971_v43, %v2974_v49  ;;  %v1314_v52 = vmax.f32 %v2983_v3, %v2986_v5  ;;  %v1317_v8 = vmax.f32 %v2995_v17, %v2998_v16  ;;  %v1320_v61 = vmax.f32 %v3006_v20, %v3009_v21 }
 0x248   : > { %v1323_v13 = vmax.f32 %v3017_v23, %v3020_v24  ;;  %v1326_v38 = vmax.f32 %v3028_v26, %v3031_v54  ;;  %v1329_v11 = vmax.f32 %v3039_v40, %v3042_v55  ;;  %v775_v35 = vsub.f32 %v3727_v36, %v2883_v14 }
 0x249   : > { %v1312_v37 = vmax.f32 %v1311_v41, %v2977_v48  ;;  %v1315_v32 = vmax.f32 %v1314_v52, %v2989_v56  ;;  %v1318_v30 = vmax.f32 %v1317_v8, %v3001_v18  ;;  %v1321_v29 = vmax.f32 %v1320_v61, %v3012_v22 }
 0x24a   : > { %v1324_v45 = vmax.f32 %v1323_v13, %v3023_v59  ;;  %v1327_v6 = vmax.f32 %v1326_v38, %v3034_v47  ;;  %v1330_v4 = vmax.f32 %v1329_v11, %v3045_v58  ;;  %v776_v53 = vsub.f32 %v3728_v33, %v2883_v14  ;;  %v3729_v13 = vld [vmem:[#allocation43_spill] sm:$0xff] }
 0x24b   : > { %v1313_v44 = vmax.f32 %v1312_v37, %v2980_v42  ;;  %v1316_v46 = vmax.f32 %v1315_v32, %v2992_v15  ;;  %v1319_v7 = vmax.f32 %v1318_v30, %v3003_v19  ;;  %v1322_v50 = vmax.f32 %v1321_v29, %v3014_v34 }
 0x24c   : > { %v1325_v31 = vmax.f32 %v1324_v45, %v3025_v25  ;;  %v1328_v12 = vmax.f32 %v1327_v6, %v3036_v27  ;;  %v3081_v51 = vmax.f32 %v1330_v4, %v3047_v39 }
 0x24d   : > { %v1359_v57 = vsub.f32 %v2971_v43, %v1313_v44  ;;  %v1360_v10 = vsub.f32 %v2974_v49, %v1313_v44  ;;  %v1361_v0 = vsub.f32 %v2977_v48, %v1313_v44  ;;  %v1362_v9 = vsub.f32 %v2980_v42, %v1313_v44 }
 0x24e   : > { %v1363_v28 = vsub.f32 %v2983_v3, %v1316_v46  ;;  %v1364_v63 = vsub.f32 %v2986_v5, %v1316_v46  ;;  %v1365_v60 = vsub.f32 %v2989_v56, %v1316_v46  ;;  %v1366_v41 = vsub.f32 %v2992_v15, %v1316_v46 }
 0x24f   : > { %v1367_v52 = vsub.f32 %v2995_v17, %v1319_v7  ;;  %v1368_v8 = vsub.f32 %v2998_v16, %v1319_v7  ;;  %v1369_v43 = vsub.f32 %v3001_v18, %v1319_v7  ;;  %v1370_v49 = vsub.f32 %v3003_v19, %v1319_v7 }
 0x250   : > { %v1371_v48 = vsub.f32 %v3006_v20, %v1322_v50  ;;  %v1372_v42 = vsub.f32 %v3009_v21, %v1322_v50  ;;  %v1373_v3 = vsub.f32 %v3012_v22, %v1322_v50  ;;  %v1374_v5 = vsub.f32 %v3014_v34, %v1322_v50 }
 0x251   : > { %v1375_v56 = vsub.f32 %v3017_v23, %v1325_v31  ;;  %v1376_v15 = vsub.f32 %v3020_v24, %v1325_v31  ;;  %v1377_v17 = vsub.f32 %v3023_v59, %v1325_v31  ;;  %v1378_v16 = vsub.f32 %v3025_v25, %v1325_v31 }
 0x252   : > { %v1379_v18 = vsub.f32 %v3028_v26, %v1328_v12  ;;  %v1380_v19 = vsub.f32 %v3031_v54, %v1328_v12  ;;  %v1381_v20 = vsub.f32 %v3034_v47, %v1328_v12  ;;  %v1382_v21 = vsub.f32 %v3036_v27, %v1328_v12 }
 0x253   : > { %v1383_v22 = vsub.f32 %v3039_v40, %v3081_v51  ;;  %v1384_v34 = vsub.f32 %v3042_v55, %v3081_v51  ;;  %v1385_v23 = vsub.f32 %v3045_v58, %v3081_v51  ;;  %v1386_v24 = vsub.f32 %v3047_v39, %v3081_v51 }
 0x254   : > { %v1423_v59 = vmul.f32 1.442695, %v1359_v57  ;;  %v1425_v25 = vmul.f32 1.442695, %v1360_v10  ;;  %v1427_v26 = vmul.f32 1.442695, %v1361_v0  ;;  %v778_v27 = vsub.f32 %v2865_v62, %v3729_v13 }
 0x255   : > { %v1429_v54 = vmul.f32 1.442695, %v1362_v9  ;;  %v1431_v61 = vmul.f32 1.442695, %v1363_v28  ;;  %v1433_v47 = vmul.f32 1.442695, %v1364_v63  ;;  %v3732_v63 = vsub.f32 %v2865_v62, %v2883_v14 }
 0x256   : > { %2095 = vpow2.f32 %v1423_v59  ;;  %v1435_v40 = vmul.f32 1.442695, %v1365_v60  ;;  %v1437_v38 = vmul.f32 1.442695, %v1366_v41  ;;  %v1439_v37 = vmul.f32 1.442695, %v1367_v52 }
 0x257   : > { %2097 = vpow2.f32 %v1425_v25  ;;  %v1441_v55 = vmul.f32 1.442695, %v1368_v8  ;;  %v1443_v32 = vmul.f32 1.442695, %v1369_v43  ;;  %v1445_v58 = vmul.f32 1.442695, %v1370_v49 }
 0x258   : > { %2099 = vpow2.f32 %v1427_v26  ;;  %v1447_v11 = vmul.f32 1.442695, %v1371_v48  ;;  %v1449_v39 = vmul.f32 1.442695, %v1372_v42  ;;  %v1451_v30 = vmul.f32 1.442695, %v1373_v3  ;;  %v1094_v3 = vpop.permute.xlu1 %1093 }
 0x259   : > { %2101 = vpow2.f32 %v1429_v54  ;;  %v1453_v29 = vmul.f32 1.442695, %v1374_v5  ;;  %v1455_v45 = vmul.f32 1.442695, %v1375_v56  ;;  %v1457_v6 = vmul.f32 1.442695, %v1376_v15 }
 0x25a   : > { %2103 = vpow2.f32 %v1431_v61  ;;  %v1459_v44 = vmul.f32 1.442695, %v1377_v17  ;;  %v3117_v46 = vmul.f32 1.442695, %v1378_v16  ;;  %v3119_v4 = vmul.f32 1.442695, %v1379_v18 }
 0x25b   : > { %2105 = vpow2.f32 %v1433_v47  ;;  %v3121_v7 = vmul.f32 1.442695, %v1380_v19  ;;  %v3123_v50 = vmul.f32 1.442695, %v1381_v20  ;;  %v3125_v31 = vmul.f32 1.442695, %v1382_v21 }
 0x25c   : > { %2107 = vpow2.f32 %v1435_v40  ;;  %v3127_v12 = vmul.f32 1.442695, %v1383_v22  ;;  %v3129_v51 = vmul.f32 1.442695, %v1384_v34  ;;  %v3131_v57 = vmul.f32 1.442695, %v1385_v23 }
 0x25d   : > { %2109 = vpow2.f32 %v1437_v38  ;;  %v3133_v10 = vmul.f32 1.442695, %v1386_v24  ;;  %v3730_v0 = vld [vmem:[#allocation47_spill] sm:$0xff]  ;;  %v838_v60 = vand.u32 2147483647, %v3732_v63  ;;  %v779_v8 = vsub.f32 %v3727_v36, %v3729_v13  ;;  %v3734_v5 = vld [vmem:[#allocation21_spill] sm:$0xff] }
 0x25e   : > { %v3731_v9 = vsub.f32 %v3730_v0, %v2883_v14  ;;  %2111 = vpow2.f32 %v1439_v37  ;;  %v839_v41 = vand.u32 2147483647, %v775_v35  ;;  %v840_v52 = vand.u32 2147483647, %v776_v53  ;;  %v3735_v15 = vld [vmem:[#allocation22_spill] sm:$0xff]  ;;  %v3736_v18 = vld [vmem:[#allocation41_spill] sm:$0xff]  ;;  %v1113_v37 = vpop.permute.xlu0 %1112 }
 0x25f   : > { %2113 = vpow2.f32 %v1441_v55  ;;  %v908_v49 = vmul.f32 %v2922_v1, %v838_v60  ;;  %v780_v48 = vsub.f32 %v3728_v33, %v3729_v13  ;;  %v3733_v14 = vsub.f32 %v3730_v0, %v3729_v13  ;;  %v3737_v54 = vld [vmem:[#allocation44_spill] sm:$0xff]  ;;  %v3738_v55 = vld [vmem:[#allocation23_spill] sm:$0xff] }
 0x260   : > { %v837_v28 = vand.u32 2147483647, %v3731_v9  ;;  %2115 = vpow2.f32 %v1443_v32  ;;  %v909_v42 = vmul.f32 %v2922_v1, %v839_v41  ;;  %v910_v35 = vmul.f32 %v2922_v1, %v840_v52 }
 0x261   : > { %v841_v53 = vand.u32 2147483647, %v3733_v14  ;;  %2117 = vpow2.f32 %v1445_v58  ;;  %v1276_v17 = vadd.f32 %v3735_v15, %v908_v49  ;;  %v842_v16 = vand.u32 2147483647, %v778_v27  ;;  %v3739_v58 = vld [vmem:[#allocation24_spill] sm:$0xff] }
 0x262   : > { %v907_v43 = vmul.f32 %v2922_v1, %v837_v28  ;;  %2119 = vpow2.f32 %v1447_v11  ;;  %v1277_v19 = vadd.f32 %v3736_v18, %v909_v42  ;;  %v1278_v20 = vadd.f32 %v1094_v3, %v910_v35 }
 0x263   : > { %v843_v21 = vand.u32 2147483647, %v779_v8  ;;  %v3161_v22 = vpop.eup %2095  ;;  %2121 = vpow2.f32 %v1449_v39  ;;  %v844_v23 = vand.u32 2147483647, %v780_v48  ;;  %v911_v24 = vmul.f32 %v2922_v1, %v841_v53  ;;  %v3740_v39 = vld [vmem:[#allocation42_spill] sm:$0xff] }
 0x264   : > { %v1275_v56 = vadd.f32 %v3734_v5, %v907_v43  ;;  %v3164_v59 = vpop.eup %2097  ;;  %2123 = vpow2.f32 %v1451_v30  ;;  %v912_v25 = vmul.f32 %v2922_v1, %v842_v16  ;;  %v781_v61 = vsub.f32 %v3730_v0, %v3737_v54 }
 0x265   : > { %v913_v26 = vmul.f32 %v2922_v1, %v843_v21  ;;  %v3170_v47 = vpop.eup %2099  ;;  %2125 = vpow2.f32 %v1453_v29  ;;  %v1551_v13 = vadd.f32 %v3164_v59, %v3161_v22  ;;  %v914_v40 = vmul.f32 %v2922_v1, %v844_v23 }
 0x266   : > { %v1332_v34 = vmax.f32 %v1275_v56, %v1276_v17  ;;  %v3175_v38 = vpop.eup %2101  ;;  %2127 = vpow2.f32 %v1455_v45  ;;  %v1279_v32 = vadd.f32 %v3738_v55, %v911_v24  ;;  %v1280_v11 = vadd.f32 %v3739_v58, %v912_v25 }
 0x267   : > { %v1281_v30 = vadd.f32 %v3740_v39, %v913_v26  ;;  %v3180_v9 = vpop.eup %2103  ;;  %2129 = vpow2.f32 %v1457_v6  ;;  %v1552_v29 = vadd.f32 %v3170_v47, %v1551_v13  ;;  %v1282_v63 = vadd.f32 %v1113_v37, %v914_v40 }
 0x268   : > { %v1333_v27 = vmax.f32 %v1332_v34, %v1277_v19  ;;  %v3183_v60 = vpop.eup %2105  ;;  %2131 = vpow2.f32 %v1459_v44  ;;  %v1335_v41 = vmax.f32 %v1279_v32, %v1280_v11  ;;  %v782_v45 = vsub.f32 %v2865_v62, %v3737_v54 }
 0x269   : > { %v783_v52 = vsub.f32 %v3727_v36, %v3737_v54  ;;  %v3189_v8 = vpop.eup %2107  ;;  %2133 = vpow2.f32 %v3117_v46  ;;  %v1553_v6 = vadd.f32 %v3175_v38, %v1552_v29  ;;  %v1554_v43 = vadd.f32 %v3183_v60, %v3180_v9 }
 0x26a   : > { %v1334_v28 = vmax.f32 %v1333_v27, %v1278_v20  ;;  %v3195_v48 = vpop.eup %2109  ;;  %2135 = vpow2.f32 %v3119_v4  ;;  %v1336_v3 = vmax.f32 %v1335_v41, %v1281_v30  ;;  %v846_v21 = vand.u32 2147483647, %v782_v45 }
 0x26b   : > { %v3198_v14 = vpop.eup %2111  ;;  %2137 = vpow2.f32 %v3121_v7  ;;  %v1555_v53 = vadd.f32 %v3189_v8, %v1554_v43 }
 0x26c   : > { %v1387_v49 = vsub.f32 %v1275_v56, %v1334_v28  ;;  %v1388_v44 = vsub.f32 %v1276_v17, %v1334_v28  ;;  %v1389_v42 = vsub.f32 %v1277_v19, %v1334_v28  ;;  %v1390_v35 = vsub.f32 %v1278_v20, %v1334_v28  ;;  %v3202_v5 = vpop.eup %2113  ;;  %v3741_v28 = vld [vmem:[#allocation45_spill] sm:$0xff] }
 0x26d   : > { %2139 = vpow2.f32 %v3123_v50  ;;  %v3207_v4 = vpop.eup %2115  ;;  %v1556_v17 = vadd.f32 %v3195_v48, %v1555_v53  ;;  %v1557_v7 = vadd.f32 %v3202_v5, %v3198_v14  ;;  %v1337_v18 = vmax.f32 %v1336_v3, %v1282_v63  ;;  %v3744_v3 = vld [vmem:[#allocation51_spill] sm:$0xff] }
 0x26e   : > { %v1479_v46 = vmul.f32 1.442695, %v1387_v49  ;;  %v1481_v56 = vmul.f32 1.442695, %v1388_v44  ;;  %v1483_v15 = vmul.f32 1.442695, %v1389_v42  ;;  %2141 = vpow2.f32 %v3125_v31  ;;  %v3213_v19 = vpop.eup %2117  ;;  %v1132_v49 = vpop.permute.xlu1 %1131 }
 0x26f   : > { %v3205_v16 = vmul.f32 1.442695, %v1390_v35  ;;  %2143 = vpow2.f32 %v3127_v12  ;;  %v784_v50 = vsub.f32 %v3728_v33, %v3737_v54  ;;  %v845_v20 = vand.u32 2147483647, %v781_v61  ;;  %v3218_v34 = vpop.eup %2119  ;;  %v3742_v44 = vld [vmem:[#allocation25_spill] sm:$0xff]  ;;  %v3743_v35 = vld [vmem:[#allocation26_spill] sm:$0xff] }
 0x270   : > { %2145 = vpow2.f32 %v3129_v51  ;;  %v1558_v31 = vadd.f32 %v3207_v4, %v1557_v7  ;;  %v1391_v23 = vsub.f32 %v1279_v32, %v1337_v18  ;;  %v1392_v24 = vsub.f32 %v1280_v11, %v1337_v18  ;;  %v3222_v25 = vpop.eup %2121 }
 0x271   : > { %2147 = vpow2.f32 %v3131_v57  ;;  %v1393_v26 = vsub.f32 %v1281_v30, %v1337_v18  ;;  %v1394_v13 = vsub.f32 %v1282_v63, %v1337_v18  ;;  %v847_v12 = vand.u32 2147483647, %v783_v52  ;;  %v3225_v27 = vpop.eup %2123 }
 0x272   : > { %2149 = vpow2.f32 %v3133_v10  ;;  %v1559_v54 = vadd.f32 %v3213_v19, %v1558_v31  ;;  %v1560_v51 = vadd.f32 %v3222_v25, %v3218_v34  ;;  %v1487_v61 = vmul.f32 1.442695, %v1391_v23  ;;  %v3231_v40 = vpop.eup %2125 }
 0x273   : > { %2151 = vrcp.f32 %v1553_v6  ;;  %v1489_v37 = vmul.f32 1.442695, %v1392_v24  ;;  %v1491_v55 = vmul.f32 1.442695, %v1393_v26  ;;  %v1493_v32 = vmul.f32 1.442695, %v1394_v13  ;;  %v3233_v57 = vpop.eup %2127 }
 0x274   : > { %v1561_v58 = vadd.f32 %v3225_v27, %v1560_v51  ;;  %2153 = vrcp.f32 %v1556_v17  ;;  %v848_v11 = vand.u32 2147483647, %v784_v50  ;;  %v915_v10 = vmul.f32 %v2922_v1, %v845_v20  ;;  %v3237_v39 = vpop.eup %2129 }
 0x275   : > { %2155 = vrcp.f32 %v1559_v54  ;;  %v916_v30 = vmul.f32 %v2922_v1, %v846_v21  ;;  %v917_v29 = vmul.f32 %v2922_v1, %v847_v12  ;;  %v785_v63 = vsub.f32 %v3730_v0, %v3741_v28  ;;  %v3243_v41 = vpop.eup %2131 }
 0x276   : > { %v1562_v45 = vadd.f32 %v3231_v40, %v1561_v58  ;;  %v1563_v52 = vadd.f32 %v3237_v39, %v3233_v57  ;;  %2157 = vpow2.f32 %v1479_v46  ;;  %v918_v6 = vmul.f32 %v2922_v1, %v848_v11  ;;  %v3249_v43 = vpop.eup %2133 }
 0x277   : > { %2159 = vpow2.f32 %v1481_v56  ;;  %v1283_v42 = vadd.f32 %v3742_v44, %v915_v10  ;;  %v1284_v53 = vadd.f32 %v3743_v35, %v916_v30  ;;  %v1285_v17 = vadd.f32 %v3744_v3, %v917_v29  ;;  %v3254_v7 = vpop.eup %2135 }
 0x278   : > { %v1564_v18 = vadd.f32 %v3243_v41, %v1563_v52  ;;  %2161 = vrcp.f32 %v1562_v45  ;;  %v1286_v50 = vadd.f32 %v1132_v49, %v918_v6  ;;  %v786_v46 = vsub.f32 %v2865_v62, %v3741_v28  ;;  %v3259_v20 = vpop.eup %2137 }
 0x279   : > { %2163 = vpow2.f32 %v1483_v15  ;;  %v1338_v56 = vmax.f32 %v1283_v42, %v1284_v53  ;;  %v787_v21 = vsub.f32 %v3727_v36, %v3741_v28  ;;  %v788_v31 = vsub.f32 %v3728_v33, %v3741_v28 }
 0x27a   : > { %v3265_v23 = vpop.eup %2139  ;;  %v1565_v24 = vadd.f32 %v3249_v43, %v1564_v18  ;;  %v1566_v26 = vadd.f32 %v3259_v20, %v3254_v7  ;;  %2165 = vpow2.f32 %v3205_v16  ;;  %v849_v13 = vand.u32 2147483647, %v785_v63 }
 0x27b   : > { %v3271_v12 = vpop.eup %2141  ;;  %2167 = vpow2.f32 %v1487_v61  ;;  %v1339_v15 = vmax.f32 %v1338_v56, %v1285_v17  ;;  %v850_v54 = vand.u32 2147483647, %v786_v46  ;;  %v851_v51 = vand.u32 2147483647, %v787_v21  ;;  %v3745_v56 = vld [vmem:[#allocation27_spill] sm:$0xff] }
 0x27c   : > { %v3273_v58 = vpop.eup %2143  ;;  %v1567_v11 = vadd.f32 %v3265_v23, %v1566_v26  ;;  %2169 = vrcp.f32 %v1565_v24  ;;  %v852_v10 = vand.u32 2147483647, %v788_v31  ;;  %v919_v30 = vmul.f32 %v2922_v1, %v849_v13  ;;  %v3746_v13 = vld [vmem:[#allocation28_spill] sm:$0xff] }
 0x27d   : > { %v3277_v29 = vpop.eup %2145  ;;  %2171 = vpow2.f32 %v1489_v37  ;;  %v1340_v28 = vmax.f32 %v1339_v15, %v1286_v50  ;;  %v920_v16 = vmul.f32 %v2922_v1, %v850_v54  ;;  %v921_v63 = vmul.f32 %v2922_v1, %v851_v51 }
 0x27e   : > { %v3281_v61 = vpop.eup %2147  ;;  %v1568_v45 = vadd.f32 %v3271_v12, %v1567_v11  ;;  %v1569_v52 = vadd.f32 %v3277_v29, %v3273_v58  ;;  %2173 = vpow2.f32 %v1491_v55  ;;  %v922_v6 = vmul.f32 %v2922_v1, %v852_v10 }
 0x27f   : > { %v3287_v49 = vpop.eup %2149  ;;  %2175 = vpow2.f32 %v1493_v32  ;;  %v1395_v37 = vsub.f32 %v1283_v42, %v1340_v28  ;;  %v1396_v44 = vsub.f32 %v1284_v53, %v1340_v28  ;;  %v1397_v35 = vsub.f32 %v1285_v17, %v1340_v28 }
 0x280   : > { %v2152_v3 = vpop.eup %2151  ;;  %v1570_v18 = vadd.f32 %v3281_v61, %v1569_v52  ;;  %2177 = vrcp.f32 %v1568_v45  ;;  %v1398_v46 = vsub.f32 %v1286_v50, %v1340_v28  ;;  %v3291_v21 = vadd.f32 %v3745_v56, %v919_v30 }
 0x281   : > { %v2154_v31 = vpop.eup %2153  ;;  %v1615_v24 = vmul.f32 0.125, %v2152_v3  ;;  %v1495_v55 = vmul.f32 1.442695, %v1395_v37  ;;  %v1497_v26 = vmul.f32 1.442695, %v1396_v44  ;;  %v3295_v15 = vadd.f32 %v3746_v13, %v920_v16  ;;  %v3748_v13 = vld [vmem:[#allocation48_spill] sm:$0xff] }
 0x282   : > { %v2156_v32 = vpop.eup %2155  ;;  %v1571_v42 = vadd.f32 %v3287_v49, %v1570_v18  ;;  %v1616_v53 = vmul.f32 0.125, %v2154_v31  ;;  %v1499_v17 = vmul.f32 1.442695, %v1397_v35  ;;  %v1501_v54 = vmul.f32 1.442695, %v1398_v46 }
 0x283   : > { %v3298_v51 = vpop.eup %2157  ;;  %v1617_v50 = vmul.f32 0.125, %v2156_v32  ;;  %v1631_v11 = vmul.f32 %v3161_v22, %v1615_v24  ;;  %v1632_v10 = vmul.f32 %v3164_v59, %v1615_v24  ;;  %v1633_v30 = vmul.f32 %v3170_v47, %v1615_v24 }
 0x284   : > { %v3303_v28 = vpop.eup %2159  ;;  %2179 = vrcp.f32 %v1571_v42  ;;  %v1634_v16 = vmul.f32 %v3175_v38, %v1615_v24  ;;  %v1635_v45 = vmul.f32 %v3180_v9, %v1616_v53  ;;  %v1636_v52 = vmul.f32 %v3183_v60, %v1616_v53 }
 0x285   : > { %v2162_v37 = vpop.eup %2161  ;;  %v1637_v44 = vmul.f32 %v3189_v8, %v1616_v53  ;;  %v1638_v35 = vmul.f32 %v3195_v48, %v1616_v53  ;;  %v1639_v22 = vmul.f32 %v3198_v14, %v1617_v50  ;;  %v1640_v59 = vmul.f32 %v3202_v5, %v1617_v50  ;;  %1695 = vst [vmem:[%s3312_s29] sm:$0xff] %v1631_v11  ;;  %v1151_v48 = vpop.permute.xlu0 %1150  ;;  %v3747_v5 = vld [vmem:[#allocation52_spill] sm:$0xff] }
 0x286   : > { %1696 = vst [vmem:[%s3312_s29 + $0x8] sm:$0xff] %v1632_v10  ;;  %1697 = vst [vmem:[%s3312_s29 + $0x10] sm:$0xff] %v1633_v30  ;;  %v3317_v47 = vpop.eup %2163  ;;  %v1618_v38 = vmul.f32 0.125, %v2162_v37  ;;  %v1641_v9 = vmul.f32 %v3207_v4, %v1617_v50  ;;  %v1642_v60 = vmul.f32 %v3213_v19, %v1617_v50  ;;  %v1572_v8 = vadd.f32 %v3303_v28, %v3298_v51 }
 0x287   : > { %1698 = vst [vmem:[%s3312_s29 + $0x18] sm:$0xff] %v1634_v16  ;;  %1699 = vst [vmem:[%s3312_s29 + $0x20] sm:$0xff] %v1635_v45  ;;  %v3326_v14 = vpop.eup %2165  ;;  %2181 = vpow2.f32 %v1495_v55  ;;  %v1289_v4 = vadd.f32 %v3747_v5, %v921_v63  ;;  %v1290_v3 = vadd.f32 %v1151_v48, %v922_v6  ;;  %v1341_v19 = vmax.f32 %v3291_v21, %v3295_v15 }
 0x288   : > { %1700 = vst [vmem:[%s3312_s29 + $0x28] sm:$0xff] %v1636_v52  ;;  %1701 = vst [vmem:[%s3312_s29 + $0x30] sm:$0xff] %v1637_v44  ;;  %v3335_v18 = vpop.eup %2167  ;;  %v1643_v46 = vmul.f32 %v3218_v34, %v1618_v38  ;;  %v1644_v56 = vmul.f32 %v3222_v25, %v1618_v38  ;;  %v1645_v31 = vmul.f32 %v3225_v27, %v1618_v38  ;;  %2183 = vpow2.f32 %v1497_v26 }
 0x289   : > { %1702 = vst [vmem:[%s3312_s29 + $0x38] sm:$0xff] %v1638_v35  ;;  %1703 = vst [vmem:[%s3312_s29 + $0x40] sm:$0xff] %v1639_v22  ;;  %v1646_v24 = vmul.f32 %v3231_v40, %v1618_v38  ;;  %v2170_v63 = vpop.eup %2169  ;;  %v1573_v6 = vadd.f32 %v3317_v47, %v1572_v8  ;;  %v1342_v55 = vmax.f32 %v1341_v19, %v1289_v4  ;;  %2185 = vpow2.f32 %v1499_v17 }
 0x28a   : > { %1704 = vst [vmem:[%s3312_s29 + $0x48] sm:$0xff] %v1640_v59  ;;  %1705 = vst [vmem:[%s3312_s29 + $0x50] sm:$0xff] %v1641_v9  ;;  %v789_v32 = vsub.f32 %v3730_v0, %v3748_v13  ;;  %v3346_v42 = vpop.eup %2171  ;;  %v1619_v34 = vmul.f32 0.125, %v2170_v63  ;;  %v790_v25 = vsub.f32 %v2865_v62, %v3748_v13  ;;  %v791_v27 = vsub.f32 %v3727_v36, %v3748_v13  ;;  %v3750_v63 = vld [vmem:[#allocation29_spill] sm:$0xff] }
 0x28b   : > { %1706 = vst [vmem:[%s3312_s29 + $0x58] sm:$0xff] %v1642_v60  ;;  %1707 = vst [vmem:[%s3312_s29 + $0x60] sm:$0xff] %v1643_v46  ;;  %v3356_v40 = vpop.eup %2173  ;;  %v1574_v26 = vadd.f32 %v3326_v14, %v1573_v6  ;;  %v1575_v0 = vadd.f32 %v3346_v42, %v3335_v18  ;;  %2187 = vpow2.f32 %v1501_v54  ;;  %v1343_v53 = vmax.f32 %v1342_v55, %v1290_v3 }
 0x28c   : > { %1708 = vst [vmem:[%s3312_s29 + $0x68] sm:$0xff] %v1644_v56  ;;  %1709 = vst [vmem:[%s3312_s29 + $0x70] sm:$0xff] %v1645_v31  ;;  %v3361_v17 = vpop.eup %2175  ;;  %v1647_v62 = vmul.f32 %v3233_v57, %v1619_v34  ;;  %v1648_v50 = vmul.f32 %v3237_v39, %v1619_v34  ;;  %v1649_v36 = vmul.f32 %v3243_v41, %v1619_v34  ;;  %v853_v37 = vand.u32 2147483647, %v789_v32  ;;  %v3411_v32 = vld [vmem:[#allocation2 + $0x10] sm:$0xff] }
 0x28d   : > { %1710 = vst [vmem:[%s3312_s29 + $0x78] sm:$0xff] %v1646_v24  ;;  %v1650_v11 = vmul.f32 %v3249_v43, %v1619_v34  ;;  %v2178_v10 = vpop.eup %2177  ;;  %2189 = vrcp.f32 %v1574_v26  ;;  %v1576_v30 = vadd.f32 %v3356_v40, %v1575_v0  ;;  %v1399_v16 = vsub.f32 %v3291_v21, %v1343_v53  ;;  %v3752_v26 = vld [vmem:[#allocation56_spill] sm:$0xff] }
 0x28e   : > { %v1400_v54 = vsub.f32 %v3295_v15, %v1343_v53  ;;  %v1620_v45 = vmul.f32 0.125, %v2178_v10  ;;  %1711 = vst [vmem:[%s3312_s29 + $0x80] sm:$0xff] %v1647_v62  ;;  %1712 = vst [vmem:[%s3312_s29 + $0x88] sm:$0xff] %v1648_v50  ;;  %v1401_v57 = vsub.f32 %v1289_v4, %v1343_v53  ;;  %v1402_v52 = vsub.f32 %v1290_v3, %v1343_v53  ;;  %v3420_v62 = vld [vmem:[#allocation2 + $0x18] sm:$0xff] }
 0x28f   : > { %1713 = vst [vmem:[%s3312_s29 + $0x90] sm:$0xff] %v1649_v36  ;;  %1714 = vst [vmem:[%s3312_s29 + $0x98] sm:$0xff] %v1650_v11  ;;  %v792_v39 = vsub.f32 %v3728_v33, %v3748_v13  ;;  %v1577_v41 = vadd.f32 %v3361_v17, %v1576_v30  ;;  %v1503_v43 = vmul.f32 1.442695, %v1399_v16  ;;  %v854_v9 = vand.u32 2147483647, %v790_v25 }
 0x290   : > { %v1505_v21 = vmul.f32 1.442695, %v1400_v54  ;;  %v1651_v15 = vmul.f32 %v3254_v7, %v1620_v45  ;;  %v1652_v44 = vmul.f32 %v3259_v20, %v1620_v45  ;;  %v1653_v35 = vmul.f32 %v3265_v23, %v1620_v45  ;;  %v3387_v23 = vld [vmem:[#allocation2] sm:$0xff] }
 0x291   : > { %v1654_v22 = vmul.f32 %v3271_v12, %v1620_v45  ;;  %v2180_v59 = vpop.eup %2179  ;;  %2191 = vrcp.f32 %v1577_v41  ;;  %v1507_v38 = vmul.f32 1.442695, %v1401_v57  ;;  %v1509_v33 = vmul.f32 1.442695, %v1402_v52  ;;  %v3749_v12 = vld [vmem:[#allocation46_spill] sm:$0xff]  ;;  %v3753_v57 = vld [vmem:[#allocation49_spill] sm:$0xff] }
 0x292   : > { %v1621_v60 = vmul.f32 0.125, %v2180_v59  ;;  %1715 = vst [vmem:[%s3312_s29 + $0xa0] sm:$0xff] %v1651_v15  ;;  %1716 = vst [vmem:[%s3312_s29 + $0xa8] sm:$0xff] %v1652_v44  ;;  %2193 = vpow2.f32 %v1503_v43  ;;  %v855_v8 = vand.u32 2147483647, %v791_v27  ;;  %v923_v7 = vmul.f32 %v2922_v1, %v853_v37 }
 0x293   : > { %1717 = vst [vmem:[%s3312_s29 + $0xb0] sm:$0xff] %v1653_v35  ;;  %1718 = vst [vmem:[%s3312_s29 + $0xb8] sm:$0xff] %v1654_v22  ;;  %v856_v48 = vand.u32 2147483647, %v792_v39  ;;  %2195 = vpow2.f32 %v1505_v21  ;;  %v924_v20 = vmul.f32 %v2922_v1, %v854_v9  ;;  %v793_v5 = vsub.f32 %v3387_v23, %v3749_v12  ;;  %v3438_v22 = vld [vmem:[%s3637_s6] ss:$0 sm:$0xff] }
 0x294   : > { %v3391_v4 = vpop.eup %2181  ;;  %v1655_v3 = vmul.f32 %v3273_v58, %v1621_v60  ;;  %v1656_v19 = vmul.f32 %v3277_v29, %v1621_v60  ;;  %v1657_v46 = vmul.f32 %v3281_v61, %v1621_v60  ;;  %v1658_v56 = vmul.f32 %v3287_v49, %v1621_v60  ;;  %v1170_v58 = vpop.permute.xlu1 %1169  ;;  %v3751_v29 = vld [vmem:[#allocation30_spill] sm:$0xff]  ;;  %v3754_v9 = vld [vmem:[#allocation31_spill] sm:$0xff] }
 0x295   : > { %2197 = vpow2.f32 %v1507_v38  ;;  %v925_v31 = vmul.f32 %v2922_v1, %v855_v8  ;;  %v926_v24 = vmul.f32 %v2922_v1, %v856_v48  ;;  %v1291_v6 = vadd.f32 %v3750_v63, %v923_v7  ;;  %v3400_v55 = vpop.eup %2183  ;;  %v3407_v61 = vld [vmem:[#allocation2 + $0x8] sm:$0xff]  ;;  %v3755_v8 = vld [vmem:[#allocation32_spill] sm:$0xff]  ;;  %v3756_v48 = vld [vmem:[#allocation57_spill] sm:$0xff] }
 0x296   : > { %1719 = vst [vmem:[%s3312_s29 + $0xc0] sm:$0xff] %v1655_v3  ;;  %1720 = vst [vmem:[%s3312_s29 + $0xc8] sm:$0xff] %v1656_v19  ;;  %2199 = vpow2.f32 %v1509_v33  ;;  %v1292_v13 = vadd.f32 %v3751_v29, %v924_v20  ;;  %v794_v49 = vsub.f32 %v3407_v61, %v3749_v12  ;;  %v795_v34 = vsub.f32 %v3411_v32, %v3749_v12  ;;  %v3415_v25 = vpop.eup %2185 }
 0x297   : > { %1721 = vst [vmem:[%s3312_s29 + $0xd0] sm:$0xff] %v1657_v46  ;;  %1722 = vst [vmem:[%s3312_s29 + $0xd8] sm:$0xff] %v1658_v56  ;;  %v1578_v27 = vadd.f32 %v3400_v55, %v3391_v4  ;;  %v1293_v0 = vadd.f32 %v3752_v26, %v925_v31  ;;  %v1294_v53 = vadd.f32 %v1170_v58, %v926_v24  ;;  %v857_v10 = vand.u32 2147483647, %v793_v5  ;;  %v1189_v24 = vpop.permute.xlu0 %1188 }
 0x298   : > { %v796_v50 = vsub.f32 %v3420_v62, %v3749_v12  ;;  %v3424_v36 = vpop.eup %2187  ;;  %v1344_v11 = vmax.f32 %v1291_v6, %v1292_v13  ;;  %v858_v30 = vand.u32 2147483647, %v794_v49  ;;  %v859_v16 = vand.u32 2147483647, %v795_v34 }
 0x299   : > { %v1579_v54 = vadd.f32 %v3415_v25, %v1578_v27  ;;  %v797_v52 = vsub.f32 %v3387_v23, %v3753_v57  ;;  %v798_v39 = vsub.f32 %v3407_v61, %v3753_v57  ;;  %v927_v21 = vmul.f32 %v2922_v1, %v857_v10 }
 0x29a   : > { %v860_v45 = vand.u32 2147483647, %v796_v50  ;;  %v2190_v41 = vpop.eup %2189  ;;  %v1345_v43 = vmax.f32 %v1344_v11, %v1293_v0  ;;  %v928_v37 = vmul.f32 %v2922_v1, %v858_v30  ;;  %v929_v15 = vmul.f32 %v2922_v1, %v859_v16 }
 0x29b   : > { %v1622_v44 = vmul.f32 0.125, %v2190_v41  ;;  %v1580_v35 = vadd.f32 %v3424_v36, %v1579_v54  ;;  %v799_v38 = vsub.f32 %v3411_v32, %v3753_v57  ;;  %v1295_v60 = vadd.f32 %v3754_v9, %v927_v21 }
 0x29c   : > { %v930_v59 = vmul.f32 %v3438_v22, %v860_v45  ;;  %v1346_v33 = vmax.f32 %v1345_v43, %v1294_v53  ;;  %v1296_v1 = vadd.f32 %v3755_v8, %v928_v37  ;;  %v1297_v7 = vadd.f32 %v3756_v48, %v929_v15  ;;  %v1208_v48 = vpop.permute.xlu1 %1207 }
 0x29d   : > { %v1659_v20 = vmul.f32 %v3298_v51, %v1622_v44  ;;  %v1660_v12 = vmul.f32 %v3303_v28, %v1622_v44  ;;  %v1661_v5 = vmul.f32 %v3317_v47, %v1622_v44  ;;  %v1662_v3 = vmul.f32 %v3326_v14, %v1622_v44  ;;  %v3757_v44 = vld [vmem:[#allocation33_spill] sm:$0xff] }
 0x29e   : > { %v2192_v19 = vpop.eup %2191  ;;  %2201 = vrcp.f32 %v1580_v35  ;;  %v1403_v46 = vsub.f32 %v1291_v6, %v1346_v33  ;;  %v1404_v56 = vsub.f32 %v1292_v13, %v1346_v33  ;;  %v1405_v31 = vsub.f32 %v1293_v0, %v1346_v33 }
 0x29f   : > { %v3450_v63 = vpop.eup %2193  ;;  %1723 = vst [vmem:[%s3312_s29 + $0xe0] sm:$0xff] %v1659_v20  ;;  %1724 = vst [vmem:[%s3312_s29 + $0xe8] sm:$0xff] %v1660_v12  ;;  %v1623_v58 = vmul.f32 0.125, %v2192_v19  ;;  %v1406_v51 = vsub.f32 %v1294_v53, %v1346_v33  ;;  %v1298_v29 = vadd.f32 %v1189_v24, %v930_v59  ;;  %v1347_v28 = vmax.f32 %v1295_v60, %v1296_v1  ;;  %v3758_v59 = vld [vmem:[#allocation34_spill] sm:$0xff] }
 0x2a0   : > { %1725 = vst [vmem:[%s3312_s29 + $0xf0] sm:$0xff] %v1661_v5  ;;  %1726 = vst [vmem:[%s3312_s29 + $0xf8] sm:$0xff] %v1662_v3  ;;  %v3456_v47 = vpop.eup %2195  ;;  %v1511_v14 = vmul.f32 1.442695, %v1403_v46  ;;  %v1513_v6 = vmul.f32 1.442695, %v1404_v56  ;;  %v800_v49 = vsub.f32 %v3420_v62, %v3753_v57 }
 0x2a1   : > { %v1515_v13 = vmul.f32 1.442695, %v1405_v31  ;;  %v1663_v34 = vmul.f32 %v3335_v18, %v1623_v58  ;;  %v1664_v27 = vmul.f32 %v3346_v42, %v1623_v58  ;;  %v1665_v26 = vmul.f32 %v3356_v40, %v1623_v58  ;;  %v3759_v12 = vld [vmem:[#allocation58_spill] sm:$0xff] }
 0x2a2   : > { %v1666_v0 = vmul.f32 %v3361_v17, %v1623_v58  ;;  %v3464_v53 = vpop.eup %2197  ;;  %v1581_v50 = vadd.f32 %v3456_v47, %v3450_v63  ;;  %2203 = vpow2.f32 %v1511_v14  ;;  %v1517_v11 = vmul.f32 1.442695, %v1406_v51  ;;  %v3761_v58 = vld [vmem:[#allocation53_spill] sm:$0xff] }
 0x2a3   : > { %v1348_v10 = vmax.f32 %v1347_v28, %v1297_v7  ;;  %v3468_v30 = vpop.eup %2199  ;;  %1727 = vst [vmem:[%s3312_s29 + $0x100] sm:$0xff] %v1663_v34  ;;  %1728 = vst [vmem:[%s3312_s29 + $0x108] sm:$0xff] %v1664_v27  ;;  %2205 = vpow2.f32 %v1513_v6  ;;  %v861_v18 = vand.u32 2147483647, %v797_v52  ;;  %v862_v42 = vand.u32 2147483647, %v798_v39 }
 0x2a4   : > { %1729 = vst [vmem:[%s3312_s29 + $0x110] sm:$0xff] %v1665_v26  ;;  %1730 = vst [vmem:[%s3312_s29 + $0x118] sm:$0xff] %v1666_v0  ;;  %v863_v40 = vand.u32 2147483647, %v799_v38  ;;  %v1582_v17 = vadd.f32 %v3464_v53, %v1581_v50  ;;  %2207 = vpow2.f32 %v1515_v13  ;;  %v864_v54 = vand.u32 2147483647, %v800_v49 }
 0x2a5   : > { %v1349_v16 = vmax.f32 %v1348_v10, %v1298_v29  ;;  %2209 = vpow2.f32 %v1517_v11  ;;  %v931_v45 = vmul.f32 %v3438_v22, %v861_v18  ;;  %v932_v57 = vmul.f32 %v3438_v22, %v862_v42 }
 0x2a6   : > { %v933_v41 = vmul.f32 %v3438_v22, %v863_v40  ;;  %v1583_v43 = vadd.f32 %v3468_v30, %v1582_v17  ;;  %v934_v39 = vmul.f32 %v3438_v22, %v864_v54  ;;  %v805_v51 = vsub.f32 %v3387_v23, %v3761_v58  ;;  %v1227_v40 = vpop.permute.xlu0 %1226 }
 0x2a7   : > { %v1407_v21 = vsub.f32 %v1295_v60, %v1349_v16  ;;  %v1408_v37 = vsub.f32 %v1296_v1, %v1349_v16  ;;  %v1409_v15 = vsub.f32 %v1297_v7, %v1349_v16  ;;  %v1410_v52 = vsub.f32 %v1298_v29, %v1349_v16  ;;  %v3760_v60 = vld [vmem:[#allocation50_spill] sm:$0xff] }
 0x2a8   : > { %v1299_v35 = vadd.f32 %v3757_v44, %v931_v45  ;;  %v1300_v38 = vadd.f32 %v3758_v59, %v932_v57  ;;  %2211 = vrcp.f32 %v1583_v43  ;;  %v1301_v5 = vadd.f32 %v3759_v12, %v933_v41 }
 0x2a9   : > { %v1519_v33 = vmul.f32 1.442695, %v1407_v21  ;;  %v1521_v9 = vmul.f32 1.442695, %v1408_v37  ;;  %v1523_v8 = vmul.f32 1.442695, %v1409_v15  ;;  %v1302_v3 = vadd.f32 %v1208_v48, %v934_v39 }
 0x2aa   : > { %v1525_v20 = vmul.f32 1.442695, %v1410_v52  ;;  %v1350_v19 = vmax.f32 %v1299_v35, %v1300_v38  ;;  %v801_v1 = vsub.f32 %v3387_v23, %v3760_v60  ;;  %v802_v7 = vsub.f32 %v3407_v61, %v3760_v60  ;;  %v3762_v21 = vld [vmem:[#allocation35_spill] sm:$0xff]  ;;  %v3763_v15 = vld [vmem:[#allocation36_spill] sm:$0xff] }
 0x2ab   : > { %2213 = vpow2.f32 %v1519_v33  ;;  %v803_v46 = vsub.f32 %v3411_v32, %v3760_v60  ;;  %v2202_v56 = vpop.eup %2201  ;;  %v804_v24 = vsub.f32 %v3420_v62, %v3760_v60  ;;  %v3764_v39 = vld [vmem:[#allocation59_spill] sm:$0xff]  ;;  %v869_v12 = vand.u32 2147483647, %v805_v51 }
 0x2ac   : > { %2215 = vpow2.f32 %v1521_v9  ;;  %v1351_v31 = vmax.f32 %v1350_v19, %v1301_v5  ;;  %v1624_v29 = vmul.f32 0.125, %v2202_v56  ;;  %v865_v28 = vand.u32 2147483647, %v801_v1 }
 0x2ad   : > { %2217 = vpow2.f32 %v1523_v8  ;;  %v866_v14 = vand.u32 2147483647, %v802_v7  ;;  %v867_v13 = vand.u32 2147483647, %v803_v46  ;;  %v868_v49 = vand.u32 2147483647, %v804_v24 }
 0x2ae   : > { %2219 = vpow2.f32 %v1525_v20  ;;  %v1352_v6 = vmax.f32 %v1351_v31, %v1302_v3  ;;  %v1667_v34 = vmul.f32 %v3391_v4, %v1624_v29  ;;  %v1668_v27 = vmul.f32 %v3400_v55, %v1624_v29 }
 0x2af   : > { %v1669_v26 = vmul.f32 %v3415_v25, %v1624_v29  ;;  %v1670_v23 = vmul.f32 %v3424_v36, %v1624_v29  ;;  %v3497_v0 = vpop.eup %2203  ;;  %v935_v4 = vmul.f32 %v3438_v22, %v865_v28  ;;  %v936_v55 = vmul.f32 %v3438_v22, %v866_v14 }
 0x2b0   : > { %v1411_v50 = vsub.f32 %v1299_v35, %v1352_v6  ;;  %v1412_v11 = vsub.f32 %v1300_v38, %v1352_v6  ;;  %v1413_v10 = vsub.f32 %v1301_v5, %v1352_v6  ;;  %v1414_v18 = vsub.f32 %v1302_v3, %v1352_v6  ;;  %v3499_v42 = vpop.eup %2205  ;;  %1731 = vst [vmem:[%s3312_s29 + $0x120] sm:$0xff] %v1667_v34  ;;  %v3766_v6 = vld [vmem:[#allocation38_spill] sm:$0xff] }
 0x2b1   : > { %1732 = vst [vmem:[%s3312_s29 + $0x128] sm:$0xff] %v1668_v27  ;;  %1733 = vst [vmem:[%s3312_s29 + $0x130] sm:$0xff] %v1669_v26  ;;  %v937_v25 = vmul.f32 %v3438_v22, %v867_v13  ;;  %v938_v36 = vmul.f32 %v3438_v22, %v868_v49  ;;  %v3509_v17 = vpop.eup %2207  ;;  %v1584_v16 = vadd.f32 %v3499_v42, %v3497_v0  ;;  %v1246_v27 = vpop.permute.xlu1 %1245 }
 0x2b2   : > { %1734 = vst [vmem:[%s3312_s29 + $0x138] sm:$0xff] %v1670_v23  ;;  %v1527_v54 = vmul.f32 1.442695, %v1411_v50  ;;  %v1529_v45 = vmul.f32 1.442695, %v1412_v11  ;;  %v3513_v41 = vpop.eup %2209  ;;  %v1303_v37 = vadd.f32 %v3762_v21, %v935_v4  ;;  %v1304_v52 = vadd.f32 %v3763_v15, %v936_v55 }
 0x2b3   : > { %v1531_v57 = vmul.f32 1.442695, %v1413_v10  ;;  %v1533_v43 = vmul.f32 1.442695, %v1414_v18  ;;  %v1305_v44 = vadd.f32 %v3764_v39, %v937_v25  ;;  %v1585_v35 = vadd.f32 %v3509_v17, %v1584_v16 }
 0x2b4   : > { %2221 = vpow2.f32 %v1527_v54  ;;  %v1306_v59 = vadd.f32 %v1227_v40, %v938_v36  ;;  %v806_v38 = vsub.f32 %v3407_v61, %v3761_v58  ;;  %v1353_v33 = vmax.f32 %v1303_v37, %v1304_v52 }
 0x2b5   : > { %2223 = vpow2.f32 %v1529_v45  ;;  %v807_v9 = vsub.f32 %v3411_v32, %v3761_v58  ;;  %v808_v8 = vsub.f32 %v3420_v62, %v3761_v58  ;;  %v2212_v48 = vpop.eup %2211  ;;  %v1586_v20 = vadd.f32 %v3513_v41, %v1585_v35 }
 0x2b6   : > { %2225 = vpow2.f32 %v1531_v57  ;;  %v870_v5 = vand.u32 2147483647, %v806_v38  ;;  %v1625_v3 = vmul.f32 0.125, %v2212_v48  ;;  %v1354_v19 = vmax.f32 %v1353_v33, %v1305_v44 }
 0x2b7   : > { %2227 = vpow2.f32 %v1533_v43  ;;  %v871_v60 = vand.u32 2147483647, %v807_v9  ;;  %v872_v32 = vand.u32 2147483647, %v808_v8  ;;  %v939_v62 = vmul.f32 %v3438_v22, %v869_v12 }
 0x2b8   : > { %v3526_v61 = vpop.eup %2213  ;;  %2229 = vrcp.f32 %v1586_v20  ;;  %v940_v1 = vmul.f32 %v3438_v22, %v870_v5  ;;  %v1671_v46 = vmul.f32 %v3450_v63, %v1625_v3  ;;  %v1672_v56 = vmul.f32 %v3456_v47, %v1625_v3  ;;  %v3765_v47 = vld [vmem:[#allocation37_spill] sm:$0xff] }
 0x2b9   : > { %v3530_v7 = vpop.eup %2215  ;;  %v1673_v31 = vmul.f32 %v3464_v53, %v1625_v3  ;;  %v1674_v24 = vmul.f32 %v3468_v30, %v1625_v3  ;;  %v1355_v29 = vmax.f32 %v1354_v19, %v1306_v59  ;;  %v941_v28 = vmul.f32 %v3438_v22, %v871_v60 }
 0x2ba   : > { %v3536_v58 = vpop.eup %2217  ;;  %v1587_v51 = vadd.f32 %v3530_v7, %v3526_v61  ;;  %1735 = vst [vmem:[%s3312_s29 + $0x140] sm:$0xff] %v1671_v46  ;;  %1736 = vst [vmem:[%s3312_s29 + $0x148] sm:$0xff] %v1672_v56  ;;  %v942_v63 = vmul.f32 %v3438_v22, %v872_v32  ;;  %v1307_v53 = vadd.f32 %v3765_v47, %v939_v62 }
 0x2bb   : > { %v3541_v14 = vpop.eup %2219  ;;  %1737 = vst [vmem:[%s3312_s29 + $0x150] sm:$0xff] %v1673_v31  ;;  %1738 = vst [vmem:[%s3312_s29 + $0x158] sm:$0xff] %v1674_v24  ;;  %v1308_v30 = vadd.f32 %v3766_v6, %v940_v1  ;;  %v1415_v49 = vsub.f32 %v1303_v37, %v1355_v29  ;;  %v1416_v34 = vsub.f32 %v1304_v52, %v1355_v29 }
 0x2bc   : > { %v1588_v13 = vadd.f32 %v3536_v58, %v1587_v51  ;;  %v1417_v26 = vsub.f32 %v1305_v44, %v1355_v29  ;;  %v1309_v23 = vadd.f32 %v2945_v2, %v941_v28  ;;  %v1418_v10 = vsub.f32 %v1306_v59, %v1355_v29 }
 0x2bd   : > { %v1356_v50 = vmax.f32 %v1307_v53, %v1308_v30  ;;  %v1535_v18 = vmul.f32 1.442695, %v1415_v49  ;;  %v1537_v40 = vmul.f32 1.442695, %v1416_v34  ;;  %v1310_v4 = vadd.f32 %v1246_v27, %v942_v63 }
 0x2be   : > { %v1589_v11 = vadd.f32 %v3541_v14, %v1588_v13  ;;  %v1539_v25 = vmul.f32 1.442695, %v1417_v26  ;;  %v1541_v54 = vmul.f32 1.442695, %v1418_v10 }
 0x2bf   : > { %v1357_v22 = vmax.f32 %v1356_v50, %v1309_v23 }
 0x2c0   : > { %2231 = vrcp.f32 %v1589_v11 }
 0x2c1   : > { %v2222_v55 = vpop.eup %2221  ;;  %2233 = vpow2.f32 %v1535_v18  ;;  %v1358_v36 = vmax.f32 %v1357_v22, %v1310_v4 }
 0x2c2   : > { %v2224_v16 = vpop.eup %2223  ;;  %2235 = vpow2.f32 %v1537_v40 }
 0x2c3   : > { %v2226_v45 = vpop.eup %2225  ;;  %v1590_v57 = vadd.f32 %v2224_v16, %v2222_v55  ;;  %v1419_v43 = vsub.f32 %v1307_v53, %v1358_v36  ;;  %v1420_v2 = vsub.f32 %v1308_v30, %v1358_v36  ;;  %v1421_v37 = vsub.f32 %v1309_v23, %v1358_v36 }
 0x2c4   : > { %v2228_v21 = vpop.eup %2227  ;;  %2237 = vpow2.f32 %v1539_v25  ;;  %v1422_v35 = vsub.f32 %v1310_v4, %v1358_v36 }
 0x2c5   : > { %v2230_v15 = vpop.eup %2229  ;;  %v1591_v52 = vadd.f32 %v2226_v45, %v1590_v57  ;;  %v1543_v39 = vmul.f32 1.442695, %v1419_v43  ;;  %2239 = vpow2.f32 %v1541_v54  ;;  %v1545_v59 = vmul.f32 1.442695, %v1420_v2 }
 0x2c6   : > { %v1626_v44 = vmul.f32 0.125, %v2230_v15  ;;  %v1547_v33 = vmul.f32 1.442695, %v1421_v37  ;;  %v1549_v12 = vmul.f32 1.442695, %v1422_v35 }
 0x2c7   : > { %v1592_v38 = vadd.f32 %v2228_v21, %v1591_v52  ;;  %2241 = vpow2.f32 %v1543_v39 }
 0x2c8   : > { %v1675_v9 = vmul.f32 %v3497_v0, %v1626_v44  ;;  %v1676_v8 = vmul.f32 %v3499_v42, %v1626_v44  ;;  %v1677_v48 = vmul.f32 %v3509_v17, %v1626_v44  ;;  %v1678_v20 = vmul.f32 %v3513_v41, %v1626_v44 }
 0x2c9   : > { %2243 = vrcp.f32 %v1592_v38 }
 0x2ca   : > { %1739 = vst [vmem:[%s3312_s29 + $0x160] sm:$0xff] %v1675_v9  ;;  %1740 = vst [vmem:[%s3312_s29 + $0x168] sm:$0xff] %v1676_v8  ;;  %2245 = vpow2.f32 %v1545_v59 }
 0x2cb   : > { %1741 = vst [vmem:[%s3312_s29 + $0x170] sm:$0xff] %v1677_v48  ;;  %1742 = vst [vmem:[%s3312_s29 + $0x178] sm:$0xff] %v1678_v20  ;;  %2247 = vpow2.f32 %v1547_v33 }
 0x2cc   : > { %2249 = vpow2.f32 %v1549_v12 }
 0x2cd   : > { %v2232_v5 = vpop.eup %2231 }
 0x2ce   : > { %v2234_v0 = vpop.eup %2233  ;;  %v1627_v3 = vmul.f32 0.125, %v2232_v5 }
 0x2cf   : > { %v2236_v42 = vpop.eup %2235 }
 0x2d0   : > { %v1679_v17 = vmul.f32 %v3526_v61, %v1627_v3  ;;  %v1680_v41 = vmul.f32 %v3530_v7, %v1627_v3  ;;  %v1681_v19 = vmul.f32 %v3536_v58, %v1627_v3  ;;  %v1682_v60 = vmul.f32 %v3541_v14, %v1627_v3 }
 0x2d1   : > { %v1593_v32 = vadd.f32 %v2236_v42, %v2234_v0  ;;  %v2238_v62 = vpop.eup %2237 }
 0x2d2   : > { %1743 = vst [vmem:[%s3312_s29 + $0x180] sm:$0xff] %v1679_v17  ;;  %1744 = vst [vmem:[%s3312_s29 + $0x188] sm:$0xff] %v1680_v41  ;;  %v2240_v1 = vpop.eup %2239 }
 0x2d3   : > { %1745 = vst [vmem:[%s3312_s29 + $0x190] sm:$0xff] %v1681_v19  ;;  %1746 = vst [vmem:[%s3312_s29 + $0x198] sm:$0xff] %v1682_v60  ;;  %v1594_v46 = vadd.f32 %v2238_v62, %v1593_v32 }
 0x2d4   : > { %v2242_v56 = vpop.eup %2241 }
 0x2d5   : > { %v1595_v31 = vadd.f32 %v2240_v1, %v1594_v46 }
 0x2d6   : > { %v2244_v61 = vpop.eup %2243 }
 0x2d7   : > { %v2246_v7 = vpop.eup %2245  ;;  %v1628_v24 = vmul.f32 0.125, %v2244_v61  ;;  %2251 = vrcp.f32 %v1595_v31 }
 0x2d8   : > { %v1596_v58 = vadd.f32 %v2246_v7, %v2242_v56  ;;  %v2248_v51 = vpop.eup %2247 }
 0x2d9   : > { %v1683_v29 = vmul.f32 %v2222_v55, %v1628_v24  ;;  %v1684_v28 = vmul.f32 %v2224_v16, %v1628_v24  ;;  %v1685_v14 = vmul.f32 %v2226_v45, %v1628_v24  ;;  %v1686_v63 = vmul.f32 %v2228_v21, %v1628_v24  ;;  %v2250_v53 = vpop.eup %2249 }
 0x2da   : > { %v1597_v47 = vadd.f32 %v2248_v51, %v1596_v58 }
 0x2db   : > { %1747 = vst [vmem:[%s3312_s29 + $0x1a0] sm:$0xff] %v1683_v29  ;;  %1748 = vst [vmem:[%s3312_s29 + $0x1a8] sm:$0xff] %v1684_v28 }
 0x2dc   : > { %1749 = vst [vmem:[%s3312_s29 + $0x1b0] sm:$0xff] %v1685_v14  ;;  %1750 = vst [vmem:[%s3312_s29 + $0x1b8] sm:$0xff] %v1686_v63  ;;  %v1598_v6 = vadd.f32 %v2250_v53, %v1597_v47 }
 0x2de   : > { %2253 = vrcp.f32 %v1598_v6 }
 0x2e4   : > { %v2252_v30 = vpop.eup %2251 }
 0x2e5   : > { %v1629_v13 = vmul.f32 0.125, %v2252_v30 }
 0x2e7   : > { %v1687_v49 = vmul.f32 %v2234_v0, %v1629_v13  ;;  %v1688_v34 = vmul.f32 %v2236_v42, %v1629_v13  ;;  %v1689_v27 = vmul.f32 %v2238_v62, %v1629_v13  ;;  %v1690_v26 = vmul.f32 %v2240_v1, %v1629_v13 }
 0x2e9   : > { %1751 = vst [vmem:[%s3312_s29 + $0x1c0] sm:$0xff] %v1687_v49  ;;  %1752 = vst [vmem:[%s3312_s29 + $0x1c8] sm:$0xff] %v1688_v34 }
 0x2ea   : > { %1753 = vst [vmem:[%s3312_s29 + $0x1d0] sm:$0xff] %v1689_v27  ;;  %1754 = vst [vmem:[%s3312_s29 + $0x1d8] sm:$0xff] %v1690_v26 }
 0x2eb   : > { %v2254_v23 = vpop.eup %2253 }
 0x2ec   : > { %v1630_v50 = vmul.f32 0.125, %v2254_v23 }
 0x2ee   : > { %v1691_v11 = vmul.f32 %v2242_v56, %v1630_v50  ;;  %v1692_v10 = vmul.f32 %v2246_v7, %v1630_v50  ;;  %v1693_v18 = vmul.f32 %v2248_v51, %v1630_v50  ;;  %v1694_v40 = vmul.f32 %v2250_v53, %v1630_v50 }
 0x2f0   : > { %1755 = vst [vmem:[%s3312_s29 + $0x1e0] sm:$0xff] %v1691_v11  ;;  %1756 = vst [vmem:[%s3312_s29 + $0x1e8] sm:$0xff] %v1692_v10 }
 0x2f1   : > { %1757 = vst [vmem:[%s3312_s29 + $0x1f0] sm:$0xff] %v1693_v18  ;;  %1758 = vst [vmem:[%s3312_s29 + $0x1f8] sm:$0xff] %v1694_v40 }
 0x2f2   : > { %2379 = shalt.err (!%p2376_p1)
}
 0x2f3   : > { %s2380_s22 = scalar_lea.hbm %s3582_s17, 8192  ;;  %s2384_s8 = scalar_lea.hbm %s3638_s7, 16384 }
 0x2f4   : > { %p2381_p5 = scmp.ne.s32.totalorder %s3582_s17, %s2380_s22  ;;  %p2385_p7 = scmp.lt.s32.totalorder %s3582_s17, %s3638_s7 }
 0x2f5   : > { %p2386_p12 = scmp.lt.s32.totalorder %s2384_s8, %s2380_s22 }
 0x2f6   : > { %p2382_p11 = pnand %p2381_p5, %p3767_p2 }
 0x2f7   : > { %p2387_p0 = por %p2386_p12, %p2385_p7 }
 0x2f8   : > { %p2383_p13 = pneg %p2382_p11 }
 0x2fa   : > { %p2388_p4 = pnand %p2387_p0, %p2383_p13 }
 0x2fc   : > { %2391 = shalt.err (!%p2388_p4)
}
 0x2fd   : > { %s2453_s18 = smov 128   ;;  %s2454_s21 = smov 8  }
 0x2fe   : > { %2026 = dma.vmem_to_hbm [thread:$0]  (%p3767_p2), %s3584_s9, 8192, %s3582_s17, %s1760_s28, %s2453_s18, %s2453_s18, %s2454_s21  }
 0x2ff PF: > { %s1789_s11 = sand.u32 1, %s2430_s24   ;;  %p3768_p8 = scmp.ne.s32.totalorder %s3664_s14, 0 }
 0x300   : > { %p3769_p9 = scmp.ge.s32.totalorder %s2442_s27, 2  ;;  %s1790_s0 = scalar_lea.sflag [#allocation4], %s1789_s11 }
 0x302   : > { %p2043_p3 = pnand %p3769_p9, %p3768_p8 }
 0x304   : > { %p2044_p10 = pneg %p2043_p3 }
 0x306   : > { %2425 = dma.done.wait (%p2044_p10), %s1790_s0, 8192  }
 0x307   : > { %2427 = vsyncadd (%p2044_p10), %s1790_s0, 4294959104  ;;  %s3770_s2 = sld [smem:[#allocation16_spill]]  ;;  %p22_p6 = scmp.ge.s32.totalorder %s2520_s30, 4  }
 0x308   : > { %s3771_s24 = smov %s2434_s25  ;;  %s3772_s25 = smov %s2438_s26 }
 0x309   : > { %s3774_s27 = smov %s2520_s30  ;;  %24 = sbr.rel (!%p22_p6) target bundleno = 10 (0xa), region = 106 }
 0x30d   : > { %s3773_s26 = smov %s3770_s2 }
 0x30e   :  { %1795 = vsyncpa [#allocation3], 1 }
 0x30f   :  { %1797 = vsyncpa [#allocation3 + $0x1], 1 }
 0x310   :  { %1798 = vsyncpa [#allocation6], 1 }
 0x311   :  { %1800 = vsyncpa [#allocation6 + $0x1], 1 }
 0x312   :  { %1801 = vsyncpa [#allocation9], 1 }
 0x313   :  { %1802 = vsyncpa [#allocation4], 1 }
 0x314   :  { %1804 = vsyncpa [#allocation4 + $0x1], 1 }

</bundles_post_ra>
